<compile_context>
chip_gen: v6e
topology: v6e:2x2x1
jax: 0.10.0
libtpu: 0.0.40
codegen_flags: <defaults>
</compile_context>

<pallas_src>
import functools

import numpy as np
import jax
import jax.numpy as jnp
from jax import lax
from jax.experimental import pallas as pl
from jax.experimental.pallas import tpu as pltpu


# ----------------------------------------------------------------------------
# Static index construction (direct port of distmtxidxlbl from the PyTorch code)
# ----------------------------------------------------------------------------
def distmtxidxlbl(batch_size, frprcam):
    indexs = np.arange(batch_size)
    idxandlbl = {}
    for blk in range(0, batch_size, frprcam):
        for row in range(blk, blk + frprcam):
            rowidx, rowlbl = [], []
            for i in range(row + 1, blk + frprcam):
                idx = np.concatenate(
                    [indexs[:blk], indexs[i:i + 1], indexs[blk + frprcam:]])
                rowidx.append(idx)
                rowlbl.append(blk)
            if rowidx:
                idxandlbl[row] = (rowidx, rowlbl)
    return idxandlbl


def calc_m(batch_size, numcams, m1, m2):
    # TODO(synk): utils.calc_m source not provided; assume a (B,B) margin matrix
    # with m1 for same-camera pairs and m2 for cross-camera pairs.
    frprcam = batch_size // numcams
    cam = np.arange(batch_size) // frprcam
    same = cam[:, None] == cam[None, :]
    return np.where(same, np.float32(m1), np.float32(m2)).astype(np.float32)


# ----------------------------------------------------------------------------
# Pallas kernel: distance matrix + gather + log-softmax + BCE (mean)
# ----------------------------------------------------------------------------
def _make_kernel(r_true, inv_count):
    def softmloss_kernel(x_ref, oa_ref, oc_ref, m_ref, lbl_ref, out_ref):
        # x_ref  : (B, D)        embeddings
        # oa_ref : (Rp, B)       one-hot anchor-row selectors (zero on pad rows)
        # oc_ref : (Rp, L, B)    one-hot gathered-column selectors
        # m_ref  : (B, B)        margin matrix
        # lbl_ref: (Rp, L)       one-hot labels (zero on pad rows)
        # out_ref: (1, 1) SMEM   scalar loss
        x = x_ref[...]

        # Pairwise squared Euclidean distances.  Gram matrix on the MXU without
        # materializing x^T (contract dim 1 of both operands); single squared-
        # norm reduction reused for rows and columns.
        gram = lax.dot_general(x, x, (((1,), (1,)), ((), ())),
                               preferred_element_type=jnp.float32)      # (B,B)
        sq = jnp.sum(x * x, axis=1, keepdims=True)                      # (B,1)
        d2 = jnp.maximum(sq + jnp.transpose(sq) - 2.0 * gram, 0.0)      # (B,B)

        # Margin applied before gathering (matches m - square(dist) in the ref).
        mfull = m_ref[...] - d2                                         # (B,B)

        # Anchor-row gather via one-hot matmul: mrow[r, :] = mfull[anchor[r], :]
        mrow = jnp.dot(oa_ref[...], mfull,
                       preferred_element_type=jnp.float32)              # (Rp,B)

        # Fused per-slot column gather: logits[r, l] = mrow[r, cols[r, l]].
        # Single VPU pass + one lane reduction (no per-slot loop / concat).
        logits = jnp.sum(oc_ref[...] * mrow[:, None, :], axis=-1)       # (Rp,L)

        # Row-wise log-softmax; reuse the reduction, divide via EUP reciprocal.
        mx = jnp.max(logits, axis=-1, keepdims=True)
        shifted = logits - mx
        e = jnp.exp(shifted)
        sum_e = jnp.sum(e, axis=-1, keepdims=True)
        logp = shifted - jnp.log(sum_e)
        p = jnp.minimum(e * pl.reciprocal(sum_e, approx=True), 1.0)

        # BCELoss(reduction='mean'); PyTorch clamps log terms at -100.
        y = lbl_ref[...]
        logp = jnp.maximum(logp, -100.0)
        log1mp = jnp.maximum(jnp.log(1.0 - p), -100.0)
        loss = -(y * logp + (1.0 - y) * log1mp)

        # Mask out the padded rows and divide by the true element count.
        row_id = lax.broadcasted_iota(jnp.int32, loss.shape, 0)
        total = jnp.sum(jnp.where(row_id < r_true, loss, 0.0))
        out_ref[0, 0] = total * inv_count

    return softmloss_kernel


# ----------------------------------------------------------------------------
# Cached builder + jitted wrapper
# ----------------------------------------------------------------------------
@functools.lru_cache(maxsize=None)
def _build_softm_loss(batch_size, framepercam, m1, m2):
    B = batch_size
    L = B - framepercam + 1
    distlbl = distmtxidxlbl(B, framepercam)

    anchors, cols, lblpos = [], [], []
    for row, (rowidx, rowlbl) in distlbl.items():
        for idx, lbl in zip(rowidx, rowlbl):
            anchors.append(row)
            cols.append(idx)
            lblpos.append(lbl)
    assert anchors, "framepercam must be >= 2 (otherwise no pairs / empty loss)"
    anchors = np.asarray(anchors, np.int32)              # (R,)
    cols = np.stack(cols).astype(np.int32)               # (R, L)
    lblpos = np.asarray(lblpos, np.int32)                # (R,)
    R = anchors.shape[0]
    R_pad = ((R + 7) // 8) * 8                           # full sublane tiles

    # Static one-hot gather operands (padded rows stay all-zero).
    oa = np.zeros((R_pad, B), np.float32)
    oa[np.arange(R), anchors] = 1.0
    # TODO(synk): oc is O(R*L*B); if batch_size grows, tile it along R with a
    # grid axis or exploit the fixed skip-the-block column structure instead of
    # keeping the whole one-hot tensor resident in VMEM (v7x has 64 MiB).
    oc = np.zeros((R_pad, L, B), np.float32)
    oc[np.arange(R)[:, None], np.arange(L)[None, :], cols] = 1.0
    labels = np.zeros((R_pad, L), np.float32)
    labels[np.arange(R), lblpos] = 1.0

    m_mat = calc_m(B, B // framepercam, m1, m2)          # (B, B)

    kernel = _make_kernel(R, 1.0 / float(R * L))
    pallas_fn = pl.pallas_call(
        kernel,
        out_shape=jax.ShapeDtypeStruct((1, 1), jnp.float32),
        in_specs=[pl.BlockSpec(memory_space=pltpu.MemorySpace.VMEM)] * 5,
        out_specs=pl.BlockSpec(memory_space=pltpu.MemorySpace.SMEM),
    )

    oa_d = jnp.asarray(oa)
    oc_d = jnp.asarray(oc)
    m_d = jnp.asarray(m_mat)
    lbl_d = jnp.asarray(labels)

    @jax.jit
    def run(x):
        # glue: squeeze NCHW-like (B, D, 1, 1) -> (B, D)
        xs = jnp.reshape(x, (x.shape[0], -1)).astype(jnp.float32)
        out = pallas_fn(xs, oa_d, oc_d, m_d, lbl_d)
        return out[0, 0]

    return run


def softm_loss(x, *, batch_size, framepercam, m1, m2):
    assert x.shape[0] == batch_size
    return _build_softm_loss(int(batch_size), int(framepercam),
                             float(m1), float(m2))(x)


if __name__ == "__main__":
    batch_size = 12       # 4 cameras x 3 frames per camera
    framepercam = 3
    feat_dim = 32
    m1, m2 = 1.0, 2.0

    key = jax.random.PRNGKey(0)
    x = jax.random.normal(key, (batch_size, feat_dim, 1, 1), dtype=jnp.float32)

    loss = softm_loss(x, batch_size=batch_size, framepercam=framepercam,
                      m1=m1, m2=m2)
    jax.block_until_ready(loss)
    print("KERNEL_OK")
</pallas_src>

<mosaic_0001>
module attributes {stable_mosaic.version = 11 : i64} {
  func.func @softmloss_kernel(%arg0: memref<12x32xf32, #tpu.memory_space<vmem>>, %arg1: memref<16x12xf32, #tpu.memory_space<vmem>>, %arg2: memref<16x10x12xf32, #tpu.memory_space<vmem>>, %arg3: memref<12x12xf32, #tpu.memory_space<vmem>>, %arg4: memref<16x10xf32, #tpu.memory_space<vmem>>, %arg5: memref<1x1xf32, #tpu.memory_space<smem>>) attributes {dimension_semantics = [], scalar_prefetch = 0 : i64, scratch_operands = 0 : i64, tpu.core_type = #tpu.core_type<tc>} {
    %c0 = arith.constant 0 : index
    %c0_0 = arith.constant 0 : index
    %0 = vector.load %arg0[%c0, %c0_0] : memref<12x32xf32, #tpu.memory_space<vmem>>, vector<12x32xf32>
    %cst = arith.constant dense<0.000000e+00> : vector<12x12xf32>
    %1 = tpu.matmul %0, %0, %cst {dimension_numbers = #tpu.dot_dimension_numbers<[1], [1], [0], [0], [0, 0, 1, 0], [], []>} : vector<12x32xf32>, vector<12x32xf32>, vector<12x12xf32> -> vector<12x12xf32>
    %2 = arith.mulf %0, %0 : vector<12x32xf32>
    %cst_1 = arith.constant dense<0.000000e+00> : vector<12xf32>
    %3 = vector.multi_reduction <add>, %2, %cst_1 [1] : vector<12x32xf32> to vector<12xf32>
    %4 = vector.shape_cast %3 : vector<12xf32> to vector<12x1xf32>
    %5 = tpu.transpose %4, [1, 0] : vector<12x1xf32> -> vector<1x12xf32>
    %6 = vector.broadcast %4 : vector<12x1xf32> to vector<12x12xf32>
    %7 = vector.broadcast %5 : vector<1x12xf32> to vector<12x12xf32>
    %8 = arith.addf %6, %7 : vector<12x12xf32>
    %cst_2 = arith.constant 2.000000e+00 : f32
    %9 = vector.broadcast %cst_2 : f32 to vector<12x12xf32>
    %10 = arith.mulf %9, %1 : vector<12x12xf32>
    %11 = arith.subf %8, %10 : vector<12x12xf32>
    %cst_3 = arith.constant 0.000000e+00 : f32
    %12 = vector.broadcast %cst_3 : f32 to vector<12x12xf32>
    %13 = arith.maximumf %11, %12 : vector<12x12xf32>
    %c0_4 = arith.constant 0 : index
    %c0_5 = arith.constant 0 : index
    %14 = vector.load %arg3[%c0_4, %c0_5] : memref<12x12xf32, #tpu.memory_space<vmem>>, vector<12x12xf32>
    %15 = arith.subf %14, %13 : vector<12x12xf32>
    %c0_6 = arith.constant 0 : index
    %c0_7 = arith.constant 0 : index
    %16 = vector.load %arg1[%c0_6, %c0_7] : memref<16x12xf32, #tpu.memory_space<vmem>>, vector<16x12xf32>
    %cst_8 = arith.constant dense<0.000000e+00> : vector<16x12xf32>
    %17 = tpu.matmul %16, %15, %cst_8 {dimension_numbers = #tpu.dot_dimension_numbers<[1], [0], [0], [1], [0, 0, 1, 1], [], []>} : vector<16x12xf32>, vector<12x12xf32>, vector<16x12xf32> -> vector<16x12xf32>
    %c0_9 = arith.constant 0 : index
    %c0_10 = arith.constant 0 : index
    %c0_11 = arith.constant 0 : index
    %18 = vector.load %arg2[%c0_9, %c0_10, %c0_11] : memref<16x10x12xf32, #tpu.memory_space<vmem>>, vector<16x10x12xf32>
    %19 = vector.shape_cast %17 : vector<16x12xf32> to vector<16x1x12xf32>
    %20 = vector.broadcast %19 : vector<16x1x12xf32> to vector<16x10x12xf32>
    %21 = arith.mulf %18, %20 : vector<16x10x12xf32>
    %cst_12 = arith.constant dense<0.000000e+00> : vector<16x10xf32>
    %22 = vector.multi_reduction <add>, %21, %cst_12 [2] : vector<16x10x12xf32> to vector<16x10xf32>
    %cst_13 = arith.constant dense<0xFF800000> : vector<16xf32>
    %23 = vector.multi_reduction <maximumf>, %22, %cst_13 [1] : vector<16x10xf32> to vector<16xf32>
    %24 = vector.shape_cast %23 : vector<16xf32> to vector<16x1xf32>
    %25 = vector.broadcast %24 : vector<16x1xf32> to vector<16x10xf32>
    %26 = arith.subf %22, %25 : vector<16x10xf32>
    %27 = math.exp %26 : vector<16x10xf32>
    %cst_14 = arith.constant dense<0.000000e+00> : vector<16xf32>
    %28 = vector.multi_reduction <add>, %27, %cst_14 [1] : vector<16x10xf32> to vector<16xf32>
    %29 = vector.shape_cast %28 : vector<16xf32> to vector<16x1xf32>
    %30 = math.log %29 : vector<16x1xf32>
    %31 = vector.broadcast %30 : vector<16x1xf32> to vector<16x10xf32>
    %32 = arith.subf %26, %31 : vector<16x10xf32>
    %33 = tpu.reciprocal %29 {approx = true} : vector<16x1xf32> -> vector<16x1xf32>
    %34 = vector.broadcast %33 : vector<16x1xf32> to vector<16x10xf32>
    %35 = arith.mulf %27, %34 : vector<16x10xf32>
    %cst_15 = arith.constant 1.000000e+00 : f32
    %36 = vector.broadcast %cst_15 : f32 to vector<16x10xf32>
    %37 = arith.minimumf %35, %36 : vector<16x10xf32>
    %c0_16 = arith.constant 0 : index
    %c0_17 = arith.constant 0 : index
    %38 = vector.load %arg4[%c0_16, %c0_17] : memref<16x10xf32, #tpu.memory_space<vmem>>, vector<16x10xf32>
    %cst_18 = arith.constant -1.000000e+02 : f32
    %39 = vector.broadcast %cst_18 : f32 to vector<16x10xf32>
    %40 = arith.maximumf %32, %39 : vector<16x10xf32>
    %cst_19 = arith.constant 1.000000e+00 : f32
    %41 = vector.broadcast %cst_19 : f32 to vector<16x10xf32>
    %42 = arith.subf %41, %37 : vector<16x10xf32>
    %43 = math.log %42 : vector<16x10xf32>
    %cst_20 = arith.constant -1.000000e+02 : f32
    %44 = vector.broadcast %cst_20 : f32 to vector<16x10xf32>
    %45 = arith.maximumf %43, %44 : vector<16x10xf32>
    %46 = arith.mulf %38, %40 : vector<16x10xf32>
    %cst_21 = arith.constant 1.000000e+00 : f32
    %47 = vector.broadcast %cst_21 : f32 to vector<16x10xf32>
    %48 = arith.subf %47, %38 : vector<16x10xf32>
    %49 = arith.mulf %48, %45 : vector<16x10xf32>
    %50 = arith.addf %46, %49 : vector<16x10xf32>
    %cst_22 = arith.constant 0.000000e+00 : f32
    %51 = vector.broadcast %cst_22 : f32 to vector<16x10xf32>
    %52 = arith.subf %51, %50 : vector<16x10xf32>
    %53 = tpu.iota {dimensions = array<i32: 0>} : vector<16x10xi32>
    %c12_i32 = arith.constant 12 : i32
    %54 = vector.broadcast %c12_i32 : i32 to vector<16x10xi32>
    %55 = arith.cmpi slt, %53, %54 : vector<16x10xi32>
    %cst_23 = arith.constant 0.000000e+00 : f32
    %56 = vector.broadcast %cst_23 : f32 to vector<16x10xf32>
    %57 = arith.select %55, %52, %56 : vector<16x10xi1>, vector<16x10xf32>
    %58 = vector.shape_cast %57 : vector<16x10xf32> to vector<1x16x10xf32>
    %cst_24 = arith.constant dense<0.000000e+00> : vector<1xf32>
    %59 = vector.multi_reduction <add>, %58, %cst_24 [1, 2] : vector<1x16x10xf32> to vector<1xf32>
    %60 = vector.shape_cast %59 : vector<1xf32> to vector<1x1x1xf32>
    %61 = vector.extract %60[0, 0, 0] : f32 from vector<1x1x1xf32>
    %cst_25 = arith.constant 0.00833333377 : f32
    %62 = arith.mulf %61, %cst_25 : f32
    %c0_26 = arith.constant 0 : index
    %c0_27 = arith.constant 0 : index
    %63 = memref.load %arg5[%c0_26, %c0_27] : memref<1x1xf32, #tpu.memory_space<smem>>
    memref.store %62, %arg5[%c0_26, %c0_27] : memref<1x1xf32, #tpu.memory_space<smem>>
    return
  }
}

</mosaic_0001>

<bundles_post_ra>
// kernel: run.1
= control target key start
LH: loop header
LB: loop body
LE: loop exit
PB: predicated region body
PF: predicated region fallthrough
CT: control target
= control target key end

     0   :  { %10 = vsyncpa [#allocation3], 0  ;;  %s3536_s0 = inlined_call_operand.vmem [shape: f32[12,32], index: 0, kind: input, shape index: {}]   ;;  %s3537_s1 = inlined_call_operand.hbm [shape: f32[16,12], index: 1, kind: input, shape index: {}]   ;;  %s3538_s2 = inlined_call_operand.hbm [shape: f32[16,10,12], index: 2, kind: input, shape index: {}]   ;;  %s3539_s3 = inlined_call_operand.vmem [shape: f32[12,12], index: 3, kind: input, shape index: {}]   ;;  %s3540_s4 = inlined_call_operand.vmem [shape: f32[16,10], index: 4, kind: input, shape index: {}]   ;;  %s3541_s5 = inlined_call_operand.hbm [shape: f32[1,1], index: 5, kind: output, shape index: {}]  }
   0x1   :  { %11 = vsyncpa [#allocation6], 0 }
   0x2   :  { %12 = vsyncpa [#allocation4], 0  ;;  %s2583_s18 = smov [#allocation2]  }
   0x3   :  { %s20_s19 = sshll.u32 %s2583_s18, 4  ;;  %s21_s19 = int_to_ptr.vmem [resolvable:$true] %s20_s19 }
   0x4   :  { %s2537_s20 = scalar_lea.vmem %s21_s19, 256  ;;  %p2542_p1 = scmp.lt.s32.totalorder %s21_s19, %s21_s19 }
   0x5   :  { %p2538_p0 = scmp.ne.s32.totalorder %s21_s19, %s2537_s20  ;;  %p2543_p2 = scmp.lt.s32.totalorder %s2537_s20, %s2537_s20 }
   0x7   :  { %p2544_p3 = por %p2543_p2, %p2542_p1 }
   0x9   :  { %p2545_p4 = pnand %p2544_p3, %p2538_p0 }
   0xb   :  { %2548 = shalt.err (!%p2545_p4)
}
   0xc   :  { %s2584_s21 = smov 128   ;;  %s2585_s22 = smov 8  }
   0xd   :  { %26 = dma.hbm_to_vmem [thread:$0]  %s3537_s1, 256, %s21_s19, [#allocation3], %s2584_s21, %s2584_s21, %s2585_s22  }
   0xe   :  { %s2586_s25 = smov [#allocation5]  }
   0xf   :  { %s32_s26 = sshll.u32 %s2586_s25, 4  ;;  %s33_s26 = int_to_ptr.vmem [resolvable:$true] %s32_s26 }
  0x10   :  { %s2557_s27 = scalar_lea.vmem %s33_s26, 4096  ;;  %p2562_p6 = scmp.lt.s32.totalorder %s33_s26, %s33_s26 }
  0x11   :  { %p2558_p5 = scmp.ne.s32.totalorder %s33_s26, %s2557_s27  ;;  %p2563_p7 = scmp.lt.s32.totalorder %s2557_s27, %s2557_s27 }
  0x13   :  { %p2564_p8 = por %p2563_p7, %p2562_p6 }
  0x15   :  { %p2565_p9 = pnand %p2564_p8, %p2558_p5 }
  0x17   :  { %2568 = shalt.err (!%p2565_p9)
}
  0x18   :  { %38 = dma.hbm_to_vmem [thread:$0]  %s3538_s2, 4096, %s33_s26, [#allocation6], %s2584_s21, %s2584_s21, %s2585_s22  }
  0x19   :  { %2577 = dma.done.wait [#allocation3], 256  }
  0x1a   :  { %2578 = vsyncadd [#allocation3], 4294967040 }
  0x1b   :  { %2579 = dma.done.wait [#allocation6], 4096  }
  0x1c   :  { %2580 = vsyncadd [#allocation6], 4294963200  ;;  %v49_v0 = vld [vmem:[%s3536_s0] sm:$0xff]  ;;  %vm51_vm0 = vcmask 261120   ;;  %v50_v1 = vld [vmem:[%s3536_s0 + $0x8] sm:$0xf]  ;;  %v174_v9 = vlaneseq }
  0x1d   :  { %v133_v2 = vmul.f32 %v49_v0, %v49_v0  ;;  %v134_v3 = vmul.f32 %v50_v1, %v50_v1  ;;  %2367 = vmatprep.subr.msk.mxu0 %vm51_vm0, %v50_v1  ;;  %2371 = vmatprep.mubr.msk.f32.mxu0 %vm51_vm0, %v49_v0  ;;  %vm138_vm1 = vcmask 257024   ;;  %v190_v8 = vld [vmem:[#allocation2] sm:$0xff]  ;;  %vm192_vm2 = vcmask 97280   ;;  %v187_v22 = vld [vmem:[%s3539_s3 + $0x8] sm:$0xf]  ;;  %v294_v47 = vld [vmem:[#allocation5 + $0x80] sm:$0xff] }
  0x1e   :  { %2368 = vmatpush3.xpose.msk.msra.mxu0 %vm51_vm0, %v50_v1  ;;  %2378 = vmatprep.mubr.msk.f32.mxu1 %vm192_vm2, %v190_v8  ;;  %v2634_v10 = vshrl.u32 %v174_v9, 7  ;;  %vm199_vm3 = vcmask 1043456   ;;  %v186_v25 = vld [vmem:[%s3539_s3] sm:$0xff]  ;;  %v191_v28 = vld [vmem:[#allocation2 + $0x8] sm:$0xff]  ;;  %v2587_v29 = vmov 1966171168  }
  0x1f   :  { %v135_v4 = vsel %vm51_vm0, %v133_v2, 0.0  ;;  %2369 = vmatprep.subr.msk.mxu0 %vm51_vm0, %v49_v0  ;;  %v139_v5 = vsel %vm138_vm1, %v134_v3, 0.0  ;;  %v314_v30 = vunpack.c.l.s4 %v2587_v29  ;;  %v295_v45 = vld [vmem:[#allocation5 + $0x88] sm:$0x3]  ;;  %v296_v48 = vld [vmem:[#allocation5 + $0x90] sm:$0xff]  ;;  %vm525_vm4 = vcmask 91136  }
  0x20   :  { %136 = vadd.xlane.f32.xlu0 %v135_v4  ;;  %3577 = vst [vmem:[#allocation11_spill] sm:$0xff] %v2634_v10  ;;  %v2637_v12 = vsub.s32 0, %v2634_v10  ;;  %v303_v52 = vld [vmem:[#allocation5 + $0xc8] sm:$0x3]  ;;  %v297_v61 = vld [vmem:[#allocation5 + $0x98] sm:$0x3] }
  0x21   :  { %v315_v31 = vunpack.c.0.s8 %v314_v30  ;;  %v283_v63 = vld [vmem:[#allocation5 + $0x28] sm:$0x3]  ;;  %v298_v29 = vld [vmem:[#allocation5 + $0xa0] sm:$0xff]  ;;  %vm662_vm5 = vcmask 130112   ;;  %vm799_vm6 = vcmask 1041409   ;;  %vm801_vm7 = vcmask 1042434  }
  0x22   :  { %2370 = vmatpush3.xpose.msk.msra.mxu0 %vm51_vm0, %v49_v0  ;;  %vm803_vm8 = vcmask 1043459   ;;  %vm805_vm9 = vcmask 1044484   ;;  %vm807_vm10 = vcmask 1045509   ;;  %vm809_vm11 = vcmask 1046534   ;;  %s2589_s14 = smov [#allocation7]  }
  0x23   :  { %v2648_v32 = vsub.s32 %v315_v31, %v2634_v10  ;;  %vm811_vm12 = vcmask 1047559   ;;  %vm822_vm13 = vcmask 80896  }
  0x24   :  { %140 = vadd.xlane.f32.xlu0 %v139_v5 }
  0x25   :  { %2372 = vmatmul.mubr.msk.f32.vlgmr.msra.gmra.mxu0 %vm51_vm0, %v50_v1 }
  0xa9   :  { %v137_v6 = vpop.xlane.xlu0 %136 }
  0xaa   :  { %142 = vxpose.xlu1.b32.start [1/2] (short) (narrow) %v137_v6, 8 }
  0xad   :  { %v141_v7 = vpop.xlane.xlu0 %140 }
  0xae   :  { %143 = vxpose.xlu1.b32.end [2/2] (short) (narrow) %v141_v7, 8 }
  0xe5   :  { %v2373_v11 = vpop.f32.mrf.mxu0 }
  0xe6   :  { %v181_v16 = vmul.f32 2.0, %v2373_v11  ;;  %v301_v11 = vld [vmem:[#allocation5 + $0xb8] sm:$0x3] }
  0xe7   :  { %v124_v13 = vpop.f32.mrf.mxu0 }
  0xe8   :  { %v180_v17 = vmul.f32 2.0, %v124_v13 }
 0x126   :  { %v158_v14 = vpop.trf.xlu1 }
 0x127   :  { %v177_v15 = vrot.slane %v158_v14, %v2637_v12 }
 0x129   :  { %v179_v18 = vadd.f32 %v177_v15, %v141_v7  ;;  %v178_v19 = vadd.f32 %v177_v15, %v137_v6  ;;  %v278_v7 = vld [vmem:[#allocation5] sm:$0xff] }
 0x12b   :  { %v183_v20 = vsub.f32 %v179_v18, %v181_v16  ;;  %v182_v21 = vsub.f32 %v178_v19, %v180_v17  ;;  %v279_v19 = vld [vmem:[#allocation5 + $0x8] sm:$0x3] }
 0x12d   :  { %v185_v23 = vmax.f32 %v183_v20, 0.0  ;;  %v184_v24 = vmax.f32 %v182_v21, 0.0 }
 0x12f   :  { %v189_v26 = vsub.f32 %v187_v22, %v185_v23  ;;  %v188_v27 = vsub.f32 %v186_v25, %v184_v24  ;;  %v287_v22 = vld [vmem:[#allocation5 + $0x48] sm:$0x3] }
 0x131   :  { %2374 = vmatprep.subr.msk.mxu1 %vm199_vm3, %v189_v26 }
 0x132   :  { %2375 = vmatpush3.msk.msra.mxu1 %vm199_vm3, %v189_v26 }
 0x133   :  { %2376 = vmatprep.subr.mxu1 %v188_v27 }
 0x134   :  { %2377 = vmatpush3.msra.mxu1 %v188_v27 }
 0x135   :  { %2379 = vmatmul.mubr.msk.f32.vlgmr.msra.gmra.mxu1 %vm192_vm2, %v191_v28 }
 0x1f5   :  { %v2380_v33 = vpop.f32.mrf.mxu1 }
 0x1f6   :  { %v361_v34 = vcombine.high %v2380_v33, %v2380_v33  ;;  %v368_v35 = vrot.slane %v2380_v33, %v2648_v32  ;;  %v305_v33 = vld [vmem:[#allocation5 + $0xd8] sm:$0x3] }
 0x1f7   :  { %v269_v36 = vpop.f32.mrf.mxu1 }
 0x1f8   :  { %v375_v37 = vrot.slane %v361_v34, %v2648_v32  ;;  %v376_v38 = vcombine.high %v368_v35, %v368_v35  ;;  %v384_v39 = vrot.slane %v368_v35, %v2648_v32  ;;  %v319_v40 = vrot.slane %v269_v36, %v2648_v32 }
 0x1f9   :  { %v312_v43 = vcombine.high %v269_v36, %v269_v36 }
 0x1fa   :  { %v2655_v41 = vrot.slane %v375_v37, %v2648_v32  ;;  %v398_v42 = vrot.slane %v376_v38, %v2648_v32  ;;  %v335_v44 = vrot.slane %v319_v40, %v2648_v32  ;;  %v445_v46 = vrot.slane %v384_v39, %v2637_v12 }
 0x1fb   :  { %v2666_v55 = vrot.slane %v312_v43, %v2648_v32  ;;  %v377_v0 = vcombine.high %v375_v37, %v375_v37  ;;  %v406_v13 = vcombine.high %v384_v39, %v384_v39  ;;  %v327_v14 = vcombine.high %v319_v40, %v319_v40  ;;  %v299_v39 = vld [vmem:[#allocation5 + $0xa8] sm:$0x3] }
 0x1fc   :  { %v449_v49 = vrot.slane %v398_v42, %v2637_v12  ;;  %v2663_v50 = vrot.slane %v2655_v41, %v2637_v12  ;;  %v357_v51 = vcombine.high %v335_v44, %v335_v44  ;;  %v507_v53 = vmul.f32 %v445_v46, %v295_v45 }
 0x1fd   :  { %v506_v54 = vmul.f32 %v445_v46, %v294_v47  ;;  %v408_v57 = vcombine.high %v398_v42, %v398_v42  ;;  %v2676_v1 = vrot.slane %v2666_v55, %v2648_v32  ;;  %v413_v3 = vrot.slane %v335_v44, %v2637_v12  ;;  %v302_v47 = vld [vmem:[#allocation5 + $0xc0] sm:$0xff] }
 0x1fe   :  { %v508_v56 = vmul.f32 %v449_v49, %v296_v48  ;;  %v574_v58 = vsel %vm525_vm4, %v507_v53, 0.0  ;;  %v515_v60 = vmul.f32 %v2663_v50, %v303_v52  ;;  %v2672_v62 = vrot.slane %v357_v51, %v2637_v12  ;;  %v285_v51 = vld [vmem:[#allocation5 + $0x38] sm:$0x3] }
 0x1ff   :  { %v571_v59 = vsel %vm192_vm2, %v506_v54, 0.0  ;;  %575 = vadd.xlane.f32.xlu1 %v574_v58  ;;  %v509_v2 = vmul.f32 %v449_v49, %v297_v61  ;;  %v2683_v8 = vrot.slane %v408_v57, %v2637_v12  ;;  %v490_v16 = vmul.f32 %v413_v3, %v278_v7  ;;  %v280_v57 = vld [vmem:[#allocation5 + $0x10] sm:$0xff] }
 0x200   :  { %572 = vadd.xlane.f32.xlu0 %v571_v59  ;;  %v577_v4 = vsel %vm192_vm2, %v508_v56, 0.0  ;;  %v598_v5 = vsel %vm525_vm4, %v515_v60, 0.0  ;;  %v495_v6 = vmul.f32 %v2672_v62, %v283_v63  ;;  %v2690_v20 = vrot.slane %v2676_v1, %v2637_v12 }
 0x201   :  { %v580_v15 = vsel %vm525_vm4, %v509_v2, 0.0  ;;  %v513_v18 = vmul.f32 %v2683_v8, %v301_v11  ;;  %v2693_v21 = vrot.slane %v377_v0, %v2648_v32  ;;  %v349_v23 = vrot.slane %v327_v14, %v2648_v32  ;;  %v281_v0 = vld [vmem:[#allocation5 + $0x18] sm:$0x3]  ;;  %v282_v14 = vld [vmem:[#allocation5 + $0x20] sm:$0xff] }
 0x202   :  { %v538_v17 = vsel %vm525_vm4, %v495_v6, 0.0  ;;  %v522_v24 = vsel %vm192_vm2, %v490_v16, 0.0  ;;  %v491_v25 = vmul.f32 %v413_v3, %v279_v19  ;;  %v453_v26 = vrot.slane %v406_v13, %v2637_v12 }
 0x203   :  { %599 = vadd.xlane.f32.xlu1 %v598_v5  ;;  %v592_v27 = vsel %vm525_vm4, %v513_v18, 0.0  ;;  %v499_v28 = vmul.f32 %v2690_v20, %v287_v22  ;;  %v2702_v30 = vrot.slane %v2693_v21, %v2637_v12  ;;  %v407_v31 = vcombine.high %v2655_v41, %v2655_v41  ;;  %v307_v41 = vld [vmem:[#allocation5 + $0xe8] sm:$0x3]  ;;  %v300_v22 = vld [vmem:[#allocation5 + $0xb0] sm:$0xff] }
 0x204   :  { %578 = vadd.xlane.f32.xlu0 %v577_v4  ;;  %v328_v34 = vcombine.high %v2666_v55, %v2666_v55  ;;  %v526_v35 = vsel %vm525_vm4, %v491_v25, 0.0  ;;  %v510_v36 = vmul.f32 %v453_v26, %v298_v29  ;;  %v359_v42 = vcombine.high %v349_v23, %v349_v23  ;;  %v291_v4 = vld [vmem:[#allocation5 + $0x68] sm:$0x3] }
 0x205   :  { %v550_v37 = vsel %vm525_vm4, %v499_v28, 0.0  ;;  %v517_v38 = vmul.f32 %v2702_v30, %v305_v33  ;;  %v2712_v40 = vrot.slane %v407_v31, %v2637_v12  ;;  %v511_v44 = vmul.f32 %v453_v26, %v299_v39  ;;  %v286_v28 = vld [vmem:[#allocation5 + $0x40] sm:$0xff]  ;;  %v304_v33 = vld [vmem:[#allocation5 + $0xd0] sm:$0xff] }
 0x206   :  { %v583_v43 = vsel %vm192_vm2, %v510_v36, 0.0  ;;  %v2718_v48 = vrot.slane %v359_v42, %v2637_v12  ;;  %v356_v49 = vrot.slane %v328_v34, %v2648_v32  ;;  %v514_v53 = vmul.f32 %v2663_v50, %v302_v47  ;;  %v289_v32 = vld [vmem:[#allocation5 + $0x58] sm:$0x3]  ;;  %v306_v36 = vld [vmem:[#allocation5 + $0xe0] sm:$0xff] }
 0x207   :  { %539 = vadd.xlane.f32.xlu1 %v538_v17  ;;  %v604_v45 = vsel %vm525_vm4, %v517_v38, 0.0  ;;  %v519_v46 = vmul.f32 %v2712_v40, %v307_v41  ;;  %v586_v52 = vsel %vm525_vm4, %v511_v44, 0.0  ;;  %v417_v54 = vrot.slane %v349_v23, %v2637_v12  ;;  %v293_v23 = vld [vmem:[#allocation5 + $0x78] sm:$0x3]  ;;  %v284_v38 = vld [vmem:[#allocation5 + $0x30] sm:$0xff]  ;;  %v290_v44 = vld [vmem:[#allocation5 + $0x60] sm:$0xff] }
 0x208   :  { %581 = vadd.xlane.f32.xlu0 %v580_v15  ;;  %v497_v56 = vmul.f32 %v2718_v48, %v285_v51  ;;  %v433_v58 = vrot.slane %v356_v49, %v2637_v12  ;;  %v358_v59 = vcombine.high %v2676_v1, %v2676_v1  ;;  %v595_v60 = vsel %vm192_vm2, %v514_v53, 0.0  ;;  %v309_v15 = vld [vmem:[#allocation5 + $0xf8] sm:$0x3] }
 0x209   :  { %v610_v55 = vsel %vm525_vm4, %v519_v46, 0.0  ;;  %v492_v61 = vmul.f32 %v417_v54, %v280_v57  ;;  %v409_v3 = vcombine.high %v2693_v21, %v2693_v21  ;;  %v493_v5 = vmul.f32 %v417_v54, %v281_v0  ;;  %v308_v46 = vld [vmem:[#allocation5 + $0xf0] sm:$0xff] }
 0x20a   :  { %v544_v50 = vsel %vm525_vm4, %v497_v56, 0.0  ;;  %v501_v63 = vmul.f32 %v433_v58, %v289_v32  ;;  %v437_v2 = vrot.slane %v358_v59, %v2637_v12  ;;  %v360_v13 = vcombine.high %v356_v49, %v356_v49  ;;  %v292_v49 = vld [vmem:[#allocation5 + $0x70] sm:$0xff] }
 0x20b   :  { %593 = vadd.xlane.f32.xlu1 %v592_v27  ;;  %v529_v1 = vsel %vm192_vm2, %v492_v61, 0.0  ;;  %v473_v11 = vrot.slane %v409_v3, %v2637_v12  ;;  %v532_v16 = vsel %vm525_vm4, %v493_v5, 0.0  ;;  %v494_v18 = vmul.f32 %v2672_v62, %v282_v14 }
 0x20c   :  { %523 = vadd.xlane.f32.xlu0 %v522_v24  ;;  %v556_v6 = vsel %vm525_vm4, %v501_v63, 0.0  ;;  %v503_v7 = vmul.f32 %v437_v2, %v291_v4  ;;  %v441_v21 = vrot.slane %v360_v13, %v2637_v12  ;;  %v512_v26 = vmul.f32 %v2683_v8, %v300_v22 }
 0x20d   :  { %v521_v19 = vmul.f32 %v473_v11, %v309_v15  ;;  %v535_v24 = vsel %vm192_vm2, %v494_v18, 0.0  ;;  %v498_v31 = vmul.f32 %v2690_v20, %v286_v28  ;;  %v496_v42 = vmul.f32 %v2718_v48, %v284_v38  ;;  %v288_v20 = vld [vmem:[#allocation5 + $0x50] sm:$0xff] }
 0x20e   :  { %v562_v17 = vsel %vm525_vm4, %v503_v7, 0.0  ;;  %v505_v27 = vmul.f32 %v441_v21, %v293_v23  ;;  %v589_v29 = vsel %vm192_vm2, %v512_v26, 0.0  ;;  %v520_v47 = vmul.f32 %v473_v11, %v308_v46 }
 0x20f   :  { %551 = vadd.xlane.f32.xlu1 %v550_v37  ;;  %v616_v25 = vsel %vm525_vm4, %v521_v19, 0.0  ;;  %v547_v34 = vsel %vm192_vm2, %v498_v31, 0.0  ;;  %v518_v37 = vmul.f32 %v2712_v40, %v306_v36  ;;  %v541_v41 = vsel %vm192_vm2, %v496_v42, 0.0 }
 0x210   :  { %527 = vadd.xlane.f32.xlu0 %v526_v35  ;;  %v568_v62 = vsel %vm525_vm4, %v505_v27, 0.0  ;;  %v516_v35 = vmul.f32 %v2702_v30, %v304_v33  ;;  %v613_v51 = vsel %vm192_vm2, %v520_v47, 0.0  ;;  %v504_v48 = vmul.f32 %v441_v21, %v292_v49 }
 0x211   :  { %v607_v39 = vsel %vm192_vm2, %v518_v37, 0.0  ;;  %v652_v7 = vand.u32 127, %v174_v9 }
 0x212   :  { %v601_v8 = vsel %vm192_vm2, %v516_v35, 0.0 }
 0x213   :  { %605 = vadd.xlane.f32.xlu1 %v604_v45  ;;  %v502_v45 = vmul.f32 %v437_v2, %v290_v44  ;;  %v657_v14 = vadd.s32 4294967288, %v652_v7 }
 0x214   :  { %584 = vadd.xlane.f32.xlu0 %v583_v43  ;;  %v500_v43 = vmul.f32 %v433_v58, %v288_v20 }
 0x215   :  { %v559_v40 = vsel %vm192_vm2, %v502_v45, 0.0 }
 0x216   :  { %v553_v30 = vsel %vm192_vm2, %v500_v43, 0.0 }
 0x217   :  { %611 = vadd.xlane.f32.xlu1 %v610_v55 }
 0x218   :  { %587 = vadd.xlane.f32.xlu0 %v586_v52  ;;  %v565_v52 = vsel %vm192_vm2, %v504_v48, 0.0 }
 0x21b   :  { %545 = vadd.xlane.f32.xlu1 %v544_v50 }
 0x21c   :  { %596 = vadd.xlane.f32.xlu0 %v595_v60 }
 0x21f   :  { %557 = vadd.xlane.f32.xlu1 %v556_v6 }
 0x220   :  { %530 = vadd.xlane.f32.xlu0 %v529_v1 }
 0x223   :  { %563 = vadd.xlane.f32.xlu1 %v562_v17  ;;  %v2807_v17 = vsub.s32 %v657_v14, %v2634_v10 }
 0x224   :  { %533 = vadd.xlane.f32.xlu0 %v532_v16  ;;  %v2804_v16 = vsub.s32 %v652_v7, %v2634_v10 }
 0x227   :  { %617 = vadd.xlane.f32.xlu1 %v616_v25 }
 0x228   :  { %536 = vadd.xlane.f32.xlu0 %v535_v24 }
 0x22b   :  { %569 = vadd.xlane.f32.xlu1 %v568_v62 }
 0x22c   :  { %590 = vadd.xlane.f32.xlu0 %v589_v29 }
 0x230   :  { %548 = vadd.xlane.f32.xlu0 %v547_v34 }
 0x234   :  { %602 = vadd.xlane.f32.xlu0 %v601_v8 }
 0x238   :  { %608 = vadd.xlane.f32.xlu0 %v607_v39 }
 0x23c   :  { %542 = vadd.xlane.f32.xlu0 %v541_v41 }
 0x240   :  { %554 = vadd.xlane.f32.xlu0 %v553_v30 }
 0x244   :  { %560 = vadd.xlane.f32.xlu0 %v559_v40 }
 0x248   :  { %614 = vadd.xlane.f32.xlu0 %v613_v51 }
 0x24c   :  { %566 = vadd.xlane.f32.xlu0 %v565_v52 }
 0x288   :  { %v2762_v55 = vpop.xlane.xlu1 %575 }
 0x289   :  { %v2758_v53 = vpop.xlane.xlu0 %572  ;;  %v734_v9 = vrot.slane %v2762_v55, %v2807_v17 }
 0x28a   :  { %v730_v21 = vrot.slane %v2758_v53, %v2804_v16 }
 0x28c   :  { %v2768_v58 = vpop.xlane.xlu1 %599  ;;  %v735_v28 = vsel %vm662_vm5, %v734_v9, %v730_v21 }
 0x28d   :  { %v2760_v54 = vpop.xlane.xlu0 %578  ;;  %v770_v33 = vrot.slane %v2768_v58, %v2807_v17 }
 0x28e   :  { %v739_v26 = vrot.slane %v2760_v54, %v2804_v16 }
 0x290   :  { %v2772_v32 = vpop.xlane.xlu1 %539 }
 0x291   :  { %v2764_v56 = vpop.xlane.xlu0 %581  ;;  %v680_v30 = vrot.slane %v2772_v32, %v2807_v17 }
 0x292   :  { %v743_v23 = vrot.slane %v2764_v56, %v2807_v17 }
 0x294   :  { %v2778_v50 = vpop.xlane.xlu1 %593  ;;  %v744_v34 = vsel %vm662_vm5, %v743_v23, %v739_v26 }
 0x295   :  { %v2766_v57 = vpop.xlane.xlu0 %523  ;;  %v761_v35 = vrot.slane %v2778_v50, %v2807_v17  ;;  %v813_v44 = vsel %vm799_vm6, %v744_v34, %v735_v28 }
 0x296   :  { %v656_v8 = vrot.slane %v2766_v57, %v2804_v16 }
 0x298   :  { %v2782_v0 = vpop.xlane.xlu1 %551 }
 0x299   :  { %v2770_v59 = vpop.xlane.xlu0 %527 }
 0x29a   :  { %v661_v29 = vrot.slane %v2770_v59, %v2807_v17 }
 0x29c   :  { %v2788_v4 = vpop.xlane.xlu1 %605  ;;  %v663_v45 = vsel %vm662_vm5, %v661_v29, %v656_v8 }
 0x29d   :  { %v2774_v60 = vpop.xlane.xlu0 %584  ;;  %v779_v49 = vrot.slane %v2788_v4, %v2807_v17 }
 0x29e   :  { %v748_v62 = vrot.slane %v2774_v60, %v2804_v16 }
 0x2a0   :  { %v2792_v5 = vpop.xlane.xlu1 %611 }
 0x2a1   :  { %v2776_v61 = vpop.xlane.xlu0 %587  ;;  %v788_v7 = vrot.slane %v2792_v5, %v2807_v17 }
 0x2a2   :  { %v752_v24 = vrot.slane %v2776_v61, %v2807_v17 }
 0x2a4   :  { %v2799_v13 = vpop.xlane.xlu1 %545  ;;  %v753_v37 = vsel %vm662_vm5, %v752_v24, %v748_v62 }
 0x2a5   :  { %v2780_v63 = vpop.xlane.xlu0 %596  ;;  %v814_v51 = vsel %vm801_vm7, %v753_v37, %v813_v44  ;;  %v689_v48 = vrot.slane %v2799_v13, %v2807_v17 }
 0x2a6   :  { %v766_v38 = vrot.slane %v2780_v63, %v2804_v16 }
 0x2a8   :  { %v2809_v18 = vpop.xlane.xlu1 %557  ;;  %v771_v14 = vsel %vm662_vm5, %v770_v33, %v766_v38  ;;  %v698_v38 = vrot.slane %v2782_v0, %v2807_v17 }
 0x2a9   :  { %v2784_v2 = vpop.xlane.xlu0 %530  ;;  %v707_v23 = vrot.slane %v2809_v18, %v2807_v17 }
 0x2aa   :  { %v667_v42 = vrot.slane %v2784_v2, %v2804_v16 }
 0x2ac   :  { %v2823_v25 = vpop.xlane.xlu1 %563 }
 0x2ad   :  { %v2786_v3 = vpop.xlane.xlu0 %533 }
 0x2ae   :  { %v671_v36 = vrot.slane %v2786_v3, %v2807_v17 }
 0x2b0   :  { %v2861_v46 = vpop.xlane.xlu1 %617  ;;  %v672_v52 = vsel %vm662_vm5, %v671_v36, %v667_v42 }
 0x2b1   :  { %v2790_v1 = vpop.xlane.xlu0 %536  ;;  %v800_v28 = vsel %vm799_vm6, %v672_v52, %v663_v45  ;;  %v797_v36 = vrot.slane %v2861_v46, %v2807_v17 }
 0x2b2   :  { %v676_v39 = vrot.slane %v2790_v1, %v2804_v16 }
 0x2b4   :  { %v681_v9 = vsel %vm662_vm5, %v680_v30, %v676_v39  ;;  %v716_v39 = vrot.slane %v2823_v25, %v2807_v17  ;;  %v2902_v42 = vpop.xlane.xlu1 %569 }
 0x2b5   :  { %v2794_v6 = vpop.xlane.xlu0 %590 }
 0x2b6   :  { %v757_v27 = vrot.slane %v2794_v6, %v2804_v16 }
 0x2b8   :  { %v762_v20 = vsel %vm662_vm5, %v761_v35, %v757_v27  ;;  %v802_v35 = vsel %vm801_vm7, %v681_v9, %v800_v28  ;;  %v2926_v28 = vsub.s32 1, %v2634_v10 }
 0x2b9   :  { %v2797_v11 = vpop.xlane.xlu0 %548  ;;  %v815_v21 = vsel %vm803_vm8, %v762_v20, %v814_v51 }
 0x2ba   :  { %v694_v29 = vrot.slane %v2797_v11, %v2804_v16  ;;  %v816_v37 = vsel %vm805_vm9, %v771_v14, %v815_v21 }
 0x2bc   :  { %v699_v45 = vsel %vm662_vm5, %v698_v38, %v694_v29 }
 0x2bd   :  { %v2801_v15 = vpop.xlane.xlu0 %602 }
 0x2be   :  { %v775_v41 = vrot.slane %v2801_v15, %v2804_v16 }
 0x2c0   :  { %v780_v24 = vsel %vm662_vm5, %v779_v49, %v775_v41 }
 0x2c1   :  { %v2811_v19 = vpop.xlane.xlu0 %608  ;;  %v817_v41 = vsel %vm807_vm10, %v780_v24, %v816_v37  ;;  %v2940_v37 = vsub.s32 3, %v2634_v10 }
 0x2c2   :  { %v784_v40 = vrot.slane %v2811_v19, %v2804_v16 }
 0x2c4   :  { %v789_v34 = vsel %vm662_vm5, %v788_v7, %v784_v40 }
 0x2c5   :  { %v2817_v22 = vpop.xlane.xlu0 %542  ;;  %v818_v30 = vsel %vm809_vm11, %v789_v34, %v817_v41 }
 0x2c6   :  { %v685_v43 = vrot.slane %v2817_v22, %v2804_v16 }
 0x2c8   :  { %v690_v26 = vsel %vm662_vm5, %v689_v48, %v685_v43  ;;  %v725_v48 = vrot.slane %v2902_v42, %v2807_v17 }
 0x2c9   :  { %v2834_v31 = vpop.xlane.xlu0 %554  ;;  %v804_v20 = vsel %vm803_vm8, %v690_v26, %v802_v35 }
 0x2ca   :  { %v703_v27 = vrot.slane %v2834_v31, %v2804_v16  ;;  %v806_v14 = vsel %vm805_vm9, %v699_v45, %v804_v20  ;;  %v2964_v45 = vsub.s32 5, %v2634_v10 }
 0x2cc   :  { %v708_v43 = vsel %vm662_vm5, %v707_v23, %v703_v27  ;;  %v2588_v27 = vmov 0  }
 0x2cd   :  { %v2865_v47 = vpop.xlane.xlu0 %560  ;;  %v808_v9 = vsel %vm807_vm10, %v708_v43, %v806_v14  ;;  %2392 = vset.pattern.permute.xlu0 %v2588_v27  ;;  %2391 = vset.pattern.permute.xlu1 %v2588_v27 }
 0x2ce   :  { %v712_v62 = vrot.slane %v2865_v47, %v2804_v16 }
 0x2d0   :  { %v717_v51 = vsel %vm662_vm5, %v716_v39, %v712_v62  ;;  %v2929_v62 = vsub.s32 2, %v2634_v10 }
 0x2d1   :  { %v2889_v33 = vpop.xlane.xlu0 %614  ;;  %v810_v23 = vsel %vm809_vm11, %v717_v51, %v808_v9 }
 0x2d2   :  { %v793_v8 = vrot.slane %v2889_v33, %v2804_v16 }
 0x2d4   :  { %v798_v44 = vsel %vm662_vm5, %v797_v36, %v793_v8 }
 0x2d5   :  { %v2910_v40 = vpop.xlane.xlu0 %566  ;;  %v819_v49 = vsel %vm811_vm12, %v798_v44, %v818_v30 }
 0x2d6   :  { %v721_v52 = vrot.slane %v2910_v40, %v2804_v16  ;;  %v826_v7 = vsel %vm822_vm13, %v819_v49, -inf }
 0x2d7   :  { %827 = vmax.xlane.f32.xlu0 %v826_v7 }
 0x2d8   :  { %v726_v21 = vsel %vm662_vm5, %v725_v48, %v721_v52  ;;  %v2976_v52 = vsub.s32 6, %v2634_v10 }
 0x2d9   :  { %v812_v24 = vsel %vm811_vm12, %v726_v21, %v810_v23  ;;  %v2988_v21 = vsub.s32 7, %v2634_v10 }
 0x2da   :  { %v823_v26 = vsel %vm822_vm13, %v812_v24, -inf }
 0x2db   :  { %824 = vmax.xlane.f32.xlu1 %v823_v26 }
 0x360   :  { %v828_v29 = vpop.xlane.xlu0 %827 }
 0x361   :  { %v866_v34 = vrot.slane %v828_v29, %v2637_v12  ;;  %v870_v35 = vrot.slane %v828_v29, %v2926_v28  ;;  %v874_v38 = vrot.slane %v828_v29, %v2929_v62  ;;  %v886_v7 = vrot.slane %v828_v29, %v2964_v45 }
 0x362   :  { %v890_v23 = vrot.slane %v828_v29, %v2976_v52 }
 0x363   :  { %v2934_v36 = vsub.f32 %v2758_v53, %v866_v34  ;;  %v2937_v8 = vsub.f32 %v2762_v55, %v866_v34  ;;  %v2944_v39 = vsub.f32 %v2760_v54, %v870_v35  ;;  %v2947_v20 = vsub.f32 %v2764_v56, %v870_v35 }
 0x364   :  { %v2952_v53 = vsub.s32 4, %v2634_v10  ;;  %v878_v55 = vrot.slane %v828_v29, %v2940_v37  ;;  %v2956_v44 = vsub.f32 %v2774_v60, %v874_v38  ;;  %v2960_v54 = vsub.f32 %v2776_v61, %v874_v38 }
 0x365   :  { %v975_v41 = vmul.f32 1.442695, %v2934_v36  ;;  %v977_v43 = vmul.f32 1.442695, %v2937_v8  ;;  %v979_v30 = vmul.f32 1.442695, %v2944_v39  ;;  %v2992_v24 = vsub.f32 %v2788_v4, %v886_v7 }
 0x366   :  { %v981_v56 = vmul.f32 1.442695, %v2947_v20  ;;  %v882_v49 = vrot.slane %v828_v29, %v2952_v53  ;;  %v2968_v51 = vsub.f32 %v2794_v6, %v878_v55  ;;  %v983_v60 = vmul.f32 1.442695, %v2956_v44 }
 0x367   :  { %2393 = vpow2.f32 %v975_v41  ;;  %v2972_v48 = vsub.f32 %v2778_v50, %v878_v55  ;;  %v985_v61 = vmul.f32 1.442695, %v2960_v54  ;;  %v2998_v27 = vsub.f32 %v2801_v15, %v886_v7  ;;  %v825_v55 = vpop.xlane.xlu1 %824 }
 0x368   :  { %2395 = vpow2.f32 %v977_v43  ;;  %v2980_v14 = vsub.f32 %v2780_v63, %v882_v49  ;;  %v987_v6 = vmul.f32 1.442695, %v2968_v51  ;;  %v2984_v9 = vsub.f32 %v2768_v58, %v882_v49 }
 0x369   :  { %2397 = vpow2.f32 %v979_v30  ;;  %v989_v50 = vmul.f32 1.442695, %v2972_v48  ;;  %v894_v4 = vrot.slane %v828_v29, %v2988_v21  ;;  %v3007_v35 = vsub.f32 %v2792_v5, %v890_v23 }
 0x36a   :  { %2399 = vpow2.f32 %v981_v56  ;;  %v991_v63 = vmul.f32 1.442695, %v2980_v14  ;;  %v993_v58 = vmul.f32 1.442695, %v2984_v9  ;;  %v997_v38 = vmul.f32 1.442695, %v2992_v24 }
 0x36b   :  { %2401 = vpow2.f32 %v983_v60  ;;  %v3013_v15 = vsub.f32 %v2811_v19, %v890_v23  ;;  %v995_v43 = vmul.f32 1.442695, %v2998_v27  ;;  %v3021_v5 = vsub.f32 %v2861_v46, %v894_v4 }
 0x36c   :  { %2403 = vpow2.f32 %v985_v61  ;;  %v1001_v29 = vmul.f32 1.442695, %v3007_v35  ;;  %v834_v56 = vrot.slane %v825_v55, %v2637_v12  ;;  %v3028_v49 = vsub.f32 %v2889_v33, %v894_v4 }
 0x36d   :  { %2405 = vpow2.f32 %v987_v6  ;;  %v999_v60 = vmul.f32 1.442695, %v3013_v15  ;;  %v1005_v46 = vmul.f32 1.442695, %v3021_v5  ;;  %v838_v7 = vrot.slane %v825_v55, %v2926_v28 }
 0x36e   :  { %2407 = vpow2.f32 %v989_v50  ;;  %v3038_v6 = vsub.f32 %v2770_v59, %v834_v56  ;;  %v1003_v33 = vmul.f32 1.442695, %v3028_v49  ;;  %v3044_v23 = vrot.slane %v825_v55, %v2952_v53 }
 0x36f   :  { %2409 = vpow2.f32 %v991_v63  ;;  %v3047_v63 = vsub.f32 %v2766_v57, %v834_v56  ;;  %v3054_v59 = vsub.f32 %v2784_v2, %v838_v7  ;;  %v842_v2 = vrot.slane %v825_v55, %v2929_v62 }
 0x370   :  { %2411 = vpow2.f32 %v993_v58  ;;  %v945_v4 = vmul.f32 1.442695, %v3038_v6  ;;  %v3064_v57 = vsub.f32 %v2797_v11, %v3044_v23  ;;  %v858_v11 = vrot.slane %v825_v55, %v2976_v52 }
 0x371   :  { %2413 = vpow2.f32 %v997_v38 }
 0x372   :  { %2415 = vpow2.f32 %v995_v43  ;;  %v3060_v43 = vrot.slane %v825_v55, %v2964_v45  ;;  %3581 = vst [vmem:[#allocation15_spill] sm:$0xff] %v3064_v57 }
 0x373   :  { %2417 = vpow2.f32 %v1001_v29  ;;  %v943_v29 = vmul.f32 1.442695, %v3047_v63 }
 0x374   :  { %v2995_v26 = vpop.eup %2393  ;;  %2419 = vpow2.f32 %v999_v60  ;;  %v3073_v60 = vsub.f32 %v2786_v3, %v838_v7  ;;  %v3081_v10 = vsub.f32 %v2834_v31, %v3060_v43  ;;  %v3089_v3 = vsub.f32 %v2790_v1, %v842_v2 }
 0x375   :  { %v3001_v34 = vpop.eup %2395  ;;  %1088 = vperm.xlu1 %2391, %v2995_v26   ;;  %2421 = vpow2.f32 %v1005_v46  ;;  %v947_v46 = vmul.f32 1.442695, %v3054_v59  ;;  %v862_v31 = vrot.slane %v825_v55, %v2988_v21  ;;  %v846_v1 = vrot.slane %v825_v55, %v2940_v37 }
 0x376   :  { %1091 = vperm.xlu0 %2392, %v3001_v34   ;;  %v3010_v41 = vpop.eup %2397  ;;  %2423 = vpow2.f32 %v1003_v33  ;;  %3584 = vst [vmem:[#allocation18_spill] sm:$0xff] %v3081_v10  ;;  %v949_v7 = vmul.f32 1.442695, %v3073_v60 }
 0x377   :  { %v3016_v30 = vpop.eup %2399  ;;  %2425 = vpow2.f32 %v945_v4 }
 0x378   :  { %v3025_v19 = vpop.eup %2401  ;;  %2427 = vpow2.f32 %v943_v29  ;;  %v3096_v29 = vsub.f32 %v2865_v47, %v858_v11  ;;  %v3111_v47 = vsub.f32 %v2910_v40, %v862_v31 }
 0x379   :  { %1094 = vperm.xlu1 %2391, %v3010_v41   ;;  %v3031_v61 = vpop.eup %2403  ;;  %2429 = vpow2.f32 %v947_v46  ;;  %v3105_v46 = vsub.f32 %v2772_v32, %v842_v2  ;;  %v3119_v32 = vsub.f32 %v2817_v22, %v846_v1 }
 0x37a   :  { %1097 = vperm.xlu0 %2392, %v3016_v30   ;;  %v3040_v50 = vpop.eup %2405  ;;  %3587 = vst [vmem:[#allocation21_spill] sm:$0xff] %v3096_v29  ;;  %3590 = vst [vmem:[#allocation24_spill] sm:$0xff] %v3111_v47  ;;  %v971_v40 = vmul.f32 1.442695, %v3111_v47 }
 0x37b   :  { %3578 = vst [vmem:[#allocation12_spill] sm:$0xff] %v3040_v50  ;;  %v3049_v58 = vpop.eup %2407  ;;  %v953_v55 = vmul.f32 1.442695, %v3105_v46  ;;  %v955_v22 = vmul.f32 1.442695, %v3119_v32 }
 0x37c   :  { %3579 = vst [vmem:[#allocation13_spill] sm:$0xff] %v3049_v58  ;;  %v3057_v38 = vpop.eup %2409 }
 0x37d   :  { %1100 = vperm.xlu1 %2391, %v3025_v19   ;;  %3580 = vst [vmem:[#allocation14_spill] sm:$0xff] %v3057_v38  ;;  %v3067_v56 = vpop.eup %2411 }
 0x37e   :  { %1103 = vperm.xlu0 %2392, %v3031_v61   ;;  %3582 = vst [vmem:[#allocation16_spill] sm:$0xff] %v3067_v56  ;;  %v3076_v33 = vpop.eup %2413 }
 0x37f   :  { %3583 = vst [vmem:[#allocation17_spill] sm:$0xff] %v3076_v33 }
 0x381   :  { %1106 = vperm.xlu1 %2391, %v3040_v50  }
 0x382   :  { %1109 = vperm.xlu0 %2392, %v3049_v58  }
 0x385   :  { %1112 = vperm.xlu1 %2391, %v3057_v38   ;;  %v959_v38 = vmul.f32 1.442695, %v3064_v57  ;;  %v963_v57 = vmul.f32 1.442695, %v3081_v10 }
 0x386   :  { %1115 = vperm.xlu0 %2392, %v3067_v56   ;;  %v3084_v56 = vpop.eup %2415 }
 0x387   :  { %3585 = vst [vmem:[#allocation19_spill] sm:$0xff] %v3084_v56  ;;  %v3092_v4 = vpop.eup %2417  ;;  %2431 = vpow2.f32 %v959_v38  ;;  %v967_v38 = vmul.f32 1.442695, %v3096_v29 }
 0x388   :  { %3586 = vst [vmem:[#allocation20_spill] sm:$0xff] %v3092_v4  ;;  %v3099_v50 = vpop.eup %2419  ;;  %2433 = vpow2.f32 %v949_v7  ;;  %v3130_v7 = vsub.f32 %v2799_v13, %v846_v1 }
 0x389   :  { %1121 = vperm.xlu1 %2391, %v3076_v33   ;;  %3588 = vst [vmem:[#allocation22_spill] sm:$0xff] %v3099_v50  ;;  %v3108_v33 = vpop.eup %2421  ;;  %2435 = vpow2.f32 %v963_v57 }
 0x38a   :  { %1118 = vperm.xlu0 %2392, %v3084_v56   ;;  %v951_v56 = vmul.f32 1.442695, %v3089_v3  ;;  %3589 = vst [vmem:[#allocation23_spill] sm:$0xff] %v3108_v33  ;;  %v3114_v10 = vpop.eup %2423  ;;  %v957_v13 = vmul.f32 1.442695, %v3130_v7 }
 0x38b   :  { %3591 = vst [vmem:[#allocation25_spill] sm:$0xff] %v3114_v10  ;;  %v3122_v2 = vpop.eup %2425 }
 0x38c   :  { %2437 = vpow2.f32 %v951_v56  ;;  %3592 = vst [vmem:[#allocation26_spill] sm:$0xff] %v3122_v2  ;;  %v3125_v57 = vpop.eup %2427 }
 0x38d   :  { %1127 = vperm.xlu1 %2391, %v3092_v4   ;;  %2439 = vpow2.f32 %v967_v38  ;;  %3593 = vst [vmem:[#allocation27_spill] sm:$0xff] %v3125_v57  ;;  %v3133_v56 = vpop.eup %2429  ;;  %v3141_v38 = vsub.f32 %v2782_v0, %v3044_v23 }
 0x38e   :  { %1124 = vperm.xlu0 %2392, %v3099_v50   ;;  %2441 = vpow2.f32 %v953_v55  ;;  %3594 = vst [vmem:[#allocation28_spill] sm:$0xff] %v3133_v56 }
 0x38f   :  { %2443 = vpow2.f32 %v971_v40  ;;  %3596 = vst [vmem:[#allocation30_spill] sm:$0xff] %v3141_v38  ;;  %v3152_v40 = vsub.f32 %v2809_v18, %v3060_v43  ;;  %v3172_v43 = vsub.f32 %v2902_v42, %v862_v31 }
 0x390   :  { %2445 = vpow2.f32 %v955_v22  ;;  %v3162_v22 = vsub.f32 %v2823_v25, %v858_v11 }
 0x391   :  { %1133 = vperm.xlu1 %2391, %v3108_v33   ;;  %3599 = vst [vmem:[#allocation33_spill] sm:$0xff] %v3152_v40  ;;  %2447 = vpow2.f32 %v957_v13  ;;  %3605 = vst [vmem:[#allocation39_spill] sm:$0xff] %v3172_v43 }
 0x392   :  { %1130 = vperm.xlu0 %2392, %v3114_v10   ;;  %3602 = vst [vmem:[#allocation36_spill] sm:$0xff] %v3162_v22  ;;  %v969_v13 = vmul.f32 1.442695, %v3162_v22 }
 0x394   :  { %v3135_v10 = vpop.eup %2431 }
 0x395   :  { %1043 = vperm.xlu1 %2391, %v3122_v2   ;;  %3595 = vst [vmem:[#allocation29_spill] sm:$0xff] %v3135_v10  ;;  %v3144_v1 = vpop.eup %2433 }
 0x396   :  { %1040 = vperm.xlu0 %2392, %v3125_v57   ;;  %3597 = vst [vmem:[#allocation31_spill] sm:$0xff] %v3144_v1  ;;  %v3146_v55 = vpop.eup %2435 }
 0x397   :  { %3598 = vst [vmem:[#allocation32_spill] sm:$0xff] %v3146_v55 }
 0x399   :  { %1046 = vperm.xlu1 %2391, %v3133_v56   ;;  %v3155_v0 = vpop.eup %2437 }
 0x39a   :  { %1064 = vperm.xlu0 %2392, %v3135_v10   ;;  %v961_v10 = vmul.f32 1.442695, %v3141_v38  ;;  %3600 = vst [vmem:[#allocation34_spill] sm:$0xff] %v3155_v0  ;;  %v3157_v23 = vpop.eup %2439 }
 0x39b   :  { %3601 = vst [vmem:[#allocation35_spill] sm:$0xff] %v3157_v23  ;;  %v3165_v56 = vpop.eup %2441 }
 0x39c   :  { %2449 = vpow2.f32 %v961_v10  ;;  %3603 = vst [vmem:[#allocation37_spill] sm:$0xff] %v3165_v56  ;;  %v3167_v18 = vpop.eup %2443  ;;  %v973_v10 = vmul.f32 1.442695, %v3172_v43 }
 0x39d   :  { %1049 = vperm.xlu1 %2391, %v3144_v1   ;;  %3604 = vst [vmem:[#allocation38_spill] sm:$0xff] %v3167_v18 }
 0x39e   :  { %1070 = vperm.xlu0 %2392, %v3146_v55   ;;  %v965_v55 = vmul.f32 1.442695, %v3152_v40 }
 0x3a0   :  { %2451 = vpow2.f32 %v965_v55 }
 0x3a1   :  { %1052 = vperm.xlu1 %2391, %v3155_v0   ;;  %2453 = vpow2.f32 %v969_v13 }
 0x3a2   :  { %1076 = vperm.xlu0 %2392, %v3157_v23   ;;  %v3175_v23 = vpop.eup %2445  ;;  %2455 = vpow2.f32 %v973_v10 }
 0x3a3   :  { %3606 = vst [vmem:[#allocation40_spill] sm:$0xff] %v3175_v23  ;;  %v3179_v25 = vpop.eup %2447 }
 0x3a4   :  { %3607 = vst [vmem:[#allocation41_spill] sm:$0xff] %v3179_v25 }
 0x3a5   :  { %1055 = vperm.xlu1 %2391, %v3165_v56  }
 0x3a6   :  { %1082 = vperm.xlu0 %2392, %v3167_v18  }
 0x3a9   :  { %1058 = vperm.xlu1 %2391, %v3175_v23   ;;  %v3182_v11 = vpop.eup %2449 }
 0x3aa   :  { %3608 = vst [vmem:[#allocation42_spill] sm:$0xff] %v3182_v11 }
 0x3ad   :  { %1061 = vperm.xlu1 %2391, %v3179_v25   ;;  %v3185_v42 = vpop.eup %2451 }
 0x3ae   :  { %3609 = vst [vmem:[#allocation43_spill] sm:$0xff] %v3185_v42  ;;  %v3188_v31 = vpop.eup %2453 }
 0x3af   :  { %3610 = vst [vmem:[#allocation44_spill] sm:$0xff] %v3188_v31  ;;  %v3191_v55 = vpop.eup %2455 }
 0x3b0   :  { %3611 = vst [vmem:[#allocation45_spill] sm:$0xff] %v3191_v55 }
 0x3b1   :  { %1067 = vperm.xlu1 %2391, %v3182_v11  }
 0x3b5   :  { %1073 = vperm.xlu1 %2391, %v3185_v42  }
 0x3b9   :  { %1079 = vperm.xlu1 %2391, %v3188_v31  }
 0x3bd   :  { %1085 = vperm.xlu1 %2391, %v3191_v55  }
 0x3f0   :  { %v1089_v13 = vpop.permute.xlu1 %1088 }
 0x3f1   :  { %v1092_v18 = vpop.permute.xlu0 %1091  ;;  %v1210_v50 = vrot.slane %v1089_v13, %v2804_v16 }
 0x3f2   :  { %v1214_v43 = vrot.slane %v1092_v18, %v2807_v17 }
 0x3f4   :  { %v1095_v23 = vpop.permute.xlu1 %1094 }
 0x3f5   :  { %v1098_v10 = vpop.permute.xlu0 %1097  ;;  %v1219_v2 = vrot.slane %v1095_v23, %v2804_v16 }
 0x3f6   :  { %v1223_v42 = vrot.slane %v1098_v10, %v2807_v17 }
 0x3f8   :  { %v1101_v25 = vpop.permute.xlu1 %1100  ;;  %v1224_v23 = vsel %vm662_vm5, %v1223_v42, %v1219_v2 }
 0x3f9   :  { %v1104_v0 = vpop.permute.xlu0 %1103  ;;  %v1228_v47 = vrot.slane %v1101_v25, %v2804_v16 }
 0x3fa   :  { %v1232_v31 = vrot.slane %v1104_v0, %v2807_v17 }
 0x3fc   :  { %v1107_v56 = vpop.permute.xlu1 %1106  ;;  %v1233_v38 = vsel %vm662_vm5, %v1232_v31, %v1228_v47 }
 0x3fd   :  { %v1110_v11 = vpop.permute.xlu0 %1109  ;;  %v1237_v29 = vrot.slane %v1107_v56, %v2804_v16 }
 0x3fe   :  { %v1241_v4 = vrot.slane %v1110_v11, %v2807_v17  ;;  %v1215_v11 = vsel %vm662_vm5, %v1214_v43, %v1210_v50 }
 0x400   :  { %v1113_v1 = vpop.permute.xlu1 %1112  ;;  %v1242_v56 = vsel %vm662_vm5, %v1241_v4, %v1237_v29 }
 0x401   :  { %v1116_v57 = vpop.permute.xlu0 %1115  ;;  %v1246_v10 = vrot.slane %v1113_v1, %v2804_v16  ;;  %v1286_v1 = vsel %vm799_vm6, %v1224_v23, %v1215_v11 }
 0x402   :  { %v1250_v22 = vrot.slane %v1116_v57, %v2807_v17  ;;  %v1287_v42 = vsel %vm801_vm7, %v1233_v38, %v1286_v1 }
 0x403   :  { %v1288_v47 = vsel %vm803_vm8, %v1242_v56, %v1287_v42 }
 0x404   :  { %v1122_v33 = vpop.permute.xlu1 %1121  ;;  %v1251_v2 = vsel %vm662_vm5, %v1250_v22, %v1246_v10 }
 0x405   :  { %v1119_v55 = vpop.permute.xlu0 %1118  ;;  %v1259_v0 = vrot.slane %v1122_v33, %v2807_v17  ;;  %v1289_v4 = vsel %vm805_vm9, %v1251_v2, %v1288_v47 }
 0x406   :  { %v1255_v40 = vrot.slane %v1119_v55, %v2804_v16 }
 0x408   :  { %v1128_v25 = vpop.permute.xlu1 %1127  ;;  %v1260_v33 = vsel %vm662_vm5, %v1259_v0, %v1255_v40 }
 0x409   :  { %v1125_v18 = vpop.permute.xlu0 %1124  ;;  %v1268_v13 = vrot.slane %v1128_v25, %v2807_v17  ;;  %v1290_v43 = vsel %vm807_vm10, %v1260_v33, %v1289_v4 }
 0x40a   :  { %v1264_v57 = vrot.slane %v1125_v18, %v2804_v16 }
 0x40c   :  { %v1134_v55 = vpop.permute.xlu1 %1133  ;;  %v1269_v31 = vsel %vm662_vm5, %v1268_v13, %v1264_v57 }
 0x40d   :  { %v1131_v25 = vpop.permute.xlu0 %1130  ;;  %v1277_v50 = vrot.slane %v1134_v55, %v2807_v17  ;;  %v1291_v38 = vsel %vm809_vm11, %v1269_v31, %v1290_v43 }
 0x40e   :  { %v1273_v29 = vrot.slane %v1131_v25, %v2804_v16 }
 0x410   :  { %v1044_v23 = vpop.permute.xlu1 %1043  ;;  %v1278_v22 = vsel %vm662_vm5, %v1277_v50, %v1273_v29 }
 0x411   :  { %v1292_v40 = vsel %vm811_vm12, %v1278_v22, %v1291_v38  ;;  %v1041_v11 = vpop.permute.xlu0 %1040  ;;  %v1142_v4 = vrot.slane %v1044_v23, %v2807_v17 }
 0x412   :  { %v1298_v10 = vsel %vm822_vm13, %v1292_v40, 0.0  ;;  %v1138_v50 = vrot.slane %v1041_v11, %v2804_v16 }
 0x413   :  { %1299 = vadd.xlane.f32.xlu0 %v1298_v10 }
 0x414   :  { %v1047_v0 = vpop.permute.xlu1 %1046  ;;  %v1143_v23 = vsel %vm662_vm5, %v1142_v4, %v1138_v50 }
 0x415   :  { %v1065_v57 = vpop.permute.xlu0 %1064  ;;  %v1147_v29 = vrot.slane %v1047_v0, %v2804_v16 }
 0x418   :  { %v1050_v18 = vpop.permute.xlu1 %1049 }
 0x419   :  { %v1071_v42 = vpop.permute.xlu0 %1070  ;;  %v1151_v55 = vrot.slane %v1050_v18, %v2807_v17 }
 0x41a   :  { %v1183_v0 = vrot.slane %v1071_v42, %v2804_v16 }
 0x41b   :  { %v1152_v40 = vsel %vm662_vm5, %v1151_v55, %v1147_v29 }
 0x41c   :  { %v1053_v13 = vpop.permute.xlu1 %1052 }
 0x41d   :  { %v1077_v47 = vpop.permute.xlu0 %1076  ;;  %v1156_v22 = vrot.slane %v1053_v13, %v2804_v16 }
 0x41e   :  { %v1192_v55 = vrot.slane %v1077_v47, %v2804_v16 }
 0x420   :  { %v1056_v56 = vpop.permute.xlu1 %1055 }
 0x421   :  { %v1160_v31 = vrot.slane %v1056_v56, %v2807_v17  ;;  %v1174_v56 = vrot.slane %v1065_v57, %v2804_v16 }
 0x423   :  { %v1161_v11 = vsel %vm662_vm5, %v1160_v31, %v1156_v22 }
 0x424   :  { %v1059_v1 = vpop.permute.xlu1 %1058 }
 0x425   :  { %v1165_v10 = vrot.slane %v1059_v1, %v2804_v16  ;;  %v1083_v1 = vpop.permute.xlu0 %1082 }
 0x426   :  { %v1201_v4 = vrot.slane %v1083_v1, %v2804_v16 }
 0x428   :  { %v1062_v2 = vpop.permute.xlu1 %1061 }
 0x429   :  { %v1169_v43 = vrot.slane %v1062_v2, %v2807_v17 }
 0x42b   :  { %v1170_v2 = vsel %vm662_vm5, %v1169_v43, %v1165_v10 }
 0x42c   :  { %v1068_v33 = vpop.permute.xlu1 %1067 }
 0x42d   :  { %v1178_v38 = vrot.slane %v1068_v33, %v2807_v17  ;;  %v1279_v33 = vsel %vm799_vm6, %v1152_v40, %v1143_v23 }
 0x42e   :  { %v1280_v57 = vsel %vm801_vm7, %v1161_v11, %v1279_v33 }
 0x42f   :  { %v1281_v29 = vsel %vm803_vm8, %v1170_v2, %v1280_v57 }
 0x430   :  { %v1074_v25 = vpop.permute.xlu1 %1073 }
 0x431   :  { %v1187_v18 = vrot.slane %v1074_v25, %v2807_v17  ;;  %v1179_v25 = vsel %vm662_vm5, %v1178_v38, %v1174_v56 }
 0x433   :  { %v1188_v31 = vsel %vm662_vm5, %v1187_v18, %v1183_v0 }
 0x434   :  { %v1080_v58 = vpop.permute.xlu1 %1079 }
 0x435   :  { %v1196_v13 = vrot.slane %v1080_v58, %v2807_v17  ;;  %v1282_v58 = vsel %vm805_vm9, %v1179_v25, %v1281_v29 }
 0x436   :  { %v1283_v47 = vsel %vm807_vm10, %v1188_v31, %v1282_v58 }
 0x437   :  { %v1197_v50 = vsel %vm662_vm5, %v1196_v13, %v1192_v55 }
 0x438   :  { %v1086_v42 = vpop.permute.xlu1 %1085  ;;  %v1284_v38 = vsel %vm809_vm11, %v1197_v50, %v1283_v47 }
 0x439   :  { %v1205_v43 = vrot.slane %v1086_v42, %v2807_v17 }
 0x43b   :  { %v1206_v22 = vsel %vm662_vm5, %v1205_v43, %v1201_v4 }
 0x43c   :  { %v1285_v40 = vsel %vm811_vm12, %v1206_v22, %v1284_v38 }
 0x43d   :  { %v1295_v10 = vsel %vm822_vm13, %v1285_v40, 0.0 }
 0x43e   :  { %1296 = vadd.xlane.f32.xlu1 %v1295_v10 }
 0x49c   :  { %v1300_v18 = vpop.xlane.xlu0 %1299 }
 0x49d   :  { %2457 = vlog2.f32 %v1300_v18 }
 0x49e   :  { %2459 = vrcp.f32 %v1300_v18 }
 0x4aa   :  { %v2458_v56 = vpop.eup %2457 }
 0x4ab   :  { %v1304_v11 = vmul.f32 0.6931472, %v2458_v56 }
 0x4ad   :  { %v1342_v23 = vrot.slane %v1304_v11, %v2637_v12  ;;  %v1346_v0 = vrot.slane %v1304_v11, %v2926_v28  ;;  %v1350_v33 = vrot.slane %v1304_v11, %v2929_v62  ;;  %v1354_v31 = vrot.slane %v1304_v11, %v2940_v37 }
 0x4ae   :  { %v1362_v43 = vrot.slane %v1304_v11, %v2964_v45  ;;  %v1366_v38 = vrot.slane %v1304_v11, %v2976_v52  ;;  %v1370_v56 = vrot.slane %v1304_v11, %v2988_v21 }
 0x4af   :  { %v1403_v2 = vsub.f32 %v2934_v36, %v1342_v23  ;;  %v1404_v13 = vsub.f32 %v2937_v8, %v1342_v23  ;;  %v1405_v25 = vsub.f32 %v2944_v39, %v1346_v0  ;;  %v1406_v57 = vsub.f32 %v2947_v20, %v1346_v0 }
 0x4b0   :  { %v1407_v42 = vsub.f32 %v2956_v44, %v1350_v33  ;;  %v1408_v36 = vsub.f32 %v2960_v54, %v1350_v33  ;;  %v1358_v8 = vrot.slane %v1304_v11, %v2952_v53  ;;  %v1409_v39 = vsub.f32 %v2968_v51, %v1354_v31 }
 0x4b1   :  { %v1585_v55 = vmax.f32 %v1403_v2, -100.0  ;;  %v1586_v1 = vmax.f32 %v1404_v13, -100.0  ;;  %v1587_v29 = vmax.f32 %v1405_v25, -100.0  ;;  %v1588_v50 = vmax.f32 %v1406_v57, -100.0 }
 0x4b2   :  { %v1589_v4 = vmax.f32 %v1407_v42, -100.0  ;;  %v1590_v58 = vmax.f32 %v1408_v36, -100.0  ;;  %v1410_v20 = vsub.f32 %v2972_v48, %v1354_v31  ;;  %v1591_v47 = vmax.f32 %v1409_v39, -100.0 }
 0x4b3   :  { %1810 = vperm.xlu0 %2392, %v1585_v55   ;;  %1813 = vperm.xlu1 %2391, %v1586_v1   ;;  %v1411_v44 = vsub.f32 %v2980_v14, %v1358_v8  ;;  %v1412_v54 = vsub.f32 %v2984_v9, %v1358_v8  ;;  %v1413_v51 = vsub.f32 %v2998_v27, %v1362_v43 }
 0x4b4   :  { %v1592_v22 = vmax.f32 %v1410_v20, -100.0  ;;  %v1414_v48 = vsub.f32 %v2992_v24, %v1362_v43  ;;  %v1415_v14 = vsub.f32 %v3013_v15, %v1366_v38  ;;  %v1416_v9 = vsub.f32 %v3007_v35, %v1366_v38  ;;  %v3285_v15 = vpop.eup %2459 }
 0x4b5   :  { %v1593_v40 = vmax.f32 %v1411_v44, -100.0  ;;  %v1594_v10 = vmax.f32 %v1412_v54, -100.0  ;;  %v1595_v23 = vmax.f32 %v1413_v51, -100.0  ;;  %v1417_v24 = vsub.f32 %v3028_v49, %v1370_v56 }
 0x4b6   :  { %v1596_v0 = vmax.f32 %v1414_v48, -100.0  ;;  %v1597_v27 = vmax.f32 %v1415_v14, -100.0  ;;  %v1598_v13 = vmax.f32 %v1416_v9, -100.0  ;;  %v1418_v18 = vsub.f32 %v3021_v5, %v1370_v56  ;;  %v3612_v56 = vld [vmem:[#allocation13_spill] sm:$0xff]  ;;  %v3613_v9 = vld [vmem:[#allocation12_spill] sm:$0xff] }
 0x4b7   :  { %1816 = vperm.xlu0 %2392, %v1587_v29   ;;  %1819 = vperm.xlu1 %2391, %v1588_v50   ;;  %v1599_v11 = vmax.f32 %v1417_v24, -100.0  ;;  %v1458_v55 = vrot.slane %v3285_v15, %v2637_v12  ;;  %v1462_v50 = vrot.slane %v3285_v15, %v2926_v28  ;;  %v1470_v44 = vrot.slane %v3285_v15, %v2940_v37 }
 0x4b8   :  { %v1600_v33 = vmax.f32 %v1418_v18, -100.0  ;;  %v3614_v18 = vld [vmem:[#allocation30_spill] sm:$0xff] }
 0x4b9   :  { %v1520_v49 = vmul.f32 %v3001_v34, %v1458_v55  ;;  %v1519_v29 = vmul.f32 %v2995_v26, %v1458_v55  ;;  %v1466_v26 = vrot.slane %v3285_v15, %v2929_v62  ;;  %v1521_v20 = vmul.f32 %v3010_v41, %v1462_v50 }
 0x4bb   :  { %1822 = vperm.xlu0 %2392, %v1589_v4   ;;  %1825 = vperm.xlu1 %2391, %v1590_v58   ;;  %v1552_v39 = vmin.f32 %v1520_v49, 1.0  ;;  %v1551_v34 = vmin.f32 %v1519_v29, 1.0  ;;  %v1524_v38 = vmul.f32 %v3031_v61, %v1466_v26  ;;  %v1553_v41 = vmin.f32 %v1521_v20, 1.0 }
 0x4bc   :  { %v1478_v49 = vrot.slane %v3285_v15, %v2964_v45 }
 0x4bd   :  { %v1556_v14 = vmin.f32 %v1524_v38, 1.0 }
 0x4bf   :  { %1828 = vperm.xlu0 %2392, %v1591_v47   ;;  %1831 = vperm.xlu1 %2391, %v1592_v22   ;;  %v1618_v22 = vsub.f32 1.0, %v1552_v39  ;;  %v3619_v39 = vld [vmem:[#allocation18_spill] sm:$0xff] }
 0x4c3   :  { %1834 = vperm.xlu0 %2392, %v1593_v40   ;;  %1837 = vperm.xlu1 %2391, %v1594_v10   ;;  %v1523_v10 = vmul.f32 %v3025_v19, %v1466_v26 }
 0x4c7   :  { %1840 = vperm.xlu0 %2392, %v1595_v23   ;;  %1843 = vperm.xlu1 %2391, %v1596_v0   ;;  %v3280_v2 = vpop.xlane.xlu1 %1296  ;;  %v1526_v23 = vmul.f32 %v3612_v56, %v1470_v44  ;;  %v1474_v0 = vrot.slane %v3285_v15, %v2952_v53 }
 0x4c8   :  { %2461 = vlog2.f32 %v3280_v2 }
 0x4c9   :  { %2463 = vlog2.f32 %v1618_v22  ;;  %v1558_v55 = vmin.f32 %v1526_v23, 1.0 }
 0x4cb   :  { %1846 = vperm.xlu0 %2392, %v1597_v27   ;;  %1849 = vperm.xlu1 %2391, %v1598_v13   ;;  %v1525_v27 = vmul.f32 %v3613_v9, %v1470_v44 }
 0x4cf   :  { %1852 = vperm.xlu0 %2392, %v1599_v11   ;;  %1855 = vperm.xlu1 %2391, %v1600_v33   ;;  %v3615_v33 = vld [vmem:[#allocation15_spill] sm:$0xff] }
 0x4d5   :  { %v2462_v35 = vpop.eup %2461 }
 0x4d6   :  { %v3289_v1 = vmul.f32 0.6931472, %v2462_v35  ;;  %v2464_v23 = vpop.eup %2463 }
 0x4d8   :  { %v1310_v25 = vrot.slane %v3289_v1, %v2637_v12  ;;  %v1314_v5 = vrot.slane %v3289_v1, %v2926_v28  ;;  %v1318_v42 = vrot.slane %v3289_v1, %v2929_v62  ;;  %v1326_v40 = vrot.slane %v3289_v1, %v2952_v53 }
 0x4d9   :  { %v1330_v19 = vrot.slane %v3289_v1, %v2964_v45  ;;  %v1338_v44 = vrot.slane %v3289_v1, %v2988_v21 }
 0x4da   :  { %v1388_v57 = vsub.f32 %v3038_v6, %v1310_v25  ;;  %v1387_v31 = vsub.f32 %v3047_v63, %v1310_v25  ;;  %v1390_v4 = vsub.f32 %v3073_v60, %v1314_v5  ;;  %v1389_v58 = vsub.f32 %v3054_v59, %v1314_v5  ;;  %v3616_v25 = vld [vmem:[#allocation16_spill] sm:$0xff] }
 0x4db   :  { %v1522_v6 = vmul.f32 %v3016_v30, %v1462_v50  ;;  %v1322_v63 = vrot.slane %v3289_v1, %v2940_v37  ;;  %v1392_v60 = vsub.f32 %v3105_v46, %v1318_v42  ;;  %v1391_v59 = vsub.f32 %v3089_v3, %v1318_v42 }
 0x4dc   :  { %v1570_v36 = vmax.f32 %v1388_v57, -100.0  ;;  %v1569_v8 = vmax.f32 %v1387_v31, -100.0  ;;  %v1572_v43 = vmax.f32 %v1390_v4, -100.0  ;;  %v1571_v47 = vmax.f32 %v1389_v58, -100.0  ;;  %v3617_v31 = vld [vmem:[#allocation14_spill] sm:$0xff]  ;;  %v3618_v4 = vld [vmem:[#allocation33_spill] sm:$0xff] }
 0x4dd   :  { %v1617_v30 = vsub.f32 1.0, %v1551_v34  ;;  %v1554_v54 = vmin.f32 %v1522_v6, 1.0  ;;  %v1574_v51 = vmax.f32 %v1392_v60, -100.0  ;;  %v1573_v46 = vmax.f32 %v1391_v59, -100.0  ;;  %v3621_v59 = vld [vmem:[#allocation19_spill] sm:$0xff] }
 0x4de   :  { %1765 = vperm.xlu1 %2391, %v1570_v36   ;;  %1762 = vperm.xlu0 %2392, %v1569_v8   ;;  %v1394_v3 = vsub.f32 %v3130_v7, %v1322_v63  ;;  %v1393_v48 = vsub.f32 %v3119_v32, %v1322_v63  ;;  %v1619_v7 = vsub.f32 1.0, %v1553_v41  ;;  %v1555_v32 = vmin.f32 %v1523_v10, 1.0  ;;  %v3620_v63 = vld [vmem:[#allocation17_spill] sm:$0xff] }
 0x4df   :  { %2465 = vlog2.f32 %v1617_v30  ;;  %v1620_v61 = vsub.f32 1.0, %v1554_v54  ;;  %v1396_v11 = vsub.f32 %v3614_v18, %v1326_v40  ;;  %v1395_v35 = vsub.f32 %v3615_v33, %v1326_v40  ;;  %v3622_v40 = vld [vmem:[#allocation36_spill] sm:$0xff]  ;;  %v3623_v10 = vld [vmem:[#allocation21_spill] sm:$0xff]  ;;  %v3628_v33 = vld [vmem:[#allocation23_spill] sm:$0xff] }
 0x4e0   :  { %2467 = vrcp.f32 %v3280_v2  ;;  %v1576_v13 = vmax.f32 %v1394_v3, -100.0  ;;  %v1575_v24 = vmax.f32 %v1393_v48, -100.0  ;;  %v1528_v5 = vmul.f32 %v3616_v25, %v1474_v0  ;;  %v3624_v48 = vld [vmem:[#allocation20_spill] sm:$0xff] }
 0x4e1   :  { %2469 = vlog2.f32 %v1620_v61  ;;  %v1622_v2 = vsub.f32 1.0, %v1556_v14  ;;  %v1557_v57 = vmin.f32 %v1525_v27, 1.0  ;;  %v1527_v29 = vmul.f32 %v3617_v31, %v1474_v0  ;;  %v3625_v61 = vld [vmem:[#allocation22_spill] sm:$0xff] }
 0x4e2   :  { %1771 = vperm.xlu1 %2391, %v1572_v43   ;;  %1768 = vperm.xlu0 %2392, %v1571_v47   ;;  %v1334_v50 = vrot.slane %v3289_v1, %v2976_v52  ;;  %2471 = vlog2.f32 %v1619_v7  ;;  %v1621_v42 = vsub.f32 1.0, %v1555_v32  ;;  %v1578_v36 = vmax.f32 %v1396_v11, -100.0  ;;  %v3626_v7 = vld [vmem:[#allocation39_spill] sm:$0xff] }
 0x4e3   :  { %v1577_v8 = vmax.f32 %v1395_v35, -100.0  ;;  %v1398_v58 = vsub.f32 %v3618_v4, %v1330_v19  ;;  %v1397_v34 = vsub.f32 %v3619_v39, %v1330_v19  ;;  %v1624_v6 = vsub.f32 1.0, %v1558_v55 }
 0x4e4   :  { %v1560_v26 = vmin.f32 %v1528_v5, 1.0  ;;  %v1530_v20 = vmul.f32 %v3620_v63, %v1478_v49  ;;  %v1482_v43 = vrot.slane %v3285_v15, %v2976_v52  ;;  %2473 = vlog2.f32 %v1622_v2  ;;  %v3629_v5 = vld [vmem:[#allocation25_spill] sm:$0xff] }
 0x4e5   :  { %v1623_v47 = vsub.f32 1.0, %v1557_v57  ;;  %v1559_v60 = vmin.f32 %v1527_v29, 1.0  ;;  %v1529_v22 = vmul.f32 %v3621_v59, %v1478_v49  ;;  %2475 = vlog2.f32 %v1621_v42  ;;  %v3631_v59 = vld [vmem:[#allocation27_spill] sm:$0xff] }
 0x4e6   :  { %1777 = vperm.xlu1 %2391, %v1574_v51   ;;  %1774 = vperm.xlu0 %2392, %v1573_v46   ;;  %v1486_v30 = vrot.slane %v3285_v15, %v2988_v21  ;;  %v1580_v54 = vmax.f32 %v1398_v58, -100.0  ;;  %v1579_v38 = vmax.f32 %v1397_v34, -100.0  ;;  %v1400_v41 = vsub.f32 %v3622_v40, %v1334_v50 }
 0x4e7   :  { %v1399_v51 = vsub.f32 %v3623_v10, %v1334_v50  ;;  %2477 = vlog2.f32 %v1624_v6  ;;  %v1626_v46 = vsub.f32 1.0, %v1560_v26  ;;  %v1562_v3 = vmin.f32 %v1530_v20, 1.0  ;;  %v3630_v26 = vld [vmem:[#allocation26_spill] sm:$0xff] }
 0x4e8   :  { %v1532_v56 = vmul.f32 %v3624_v48, %v1482_v43  ;;  %2479 = vlog2.f32 %v1623_v47  ;;  %v1625_v1 = vsub.f32 1.0, %v1559_v60  ;;  %v1561_v0 = vmin.f32 %v1529_v22, 1.0 }
 0x4e9   :  { %v1531_v14 = vmul.f32 %v3625_v61, %v1482_v43  ;;  %v1582_v27 = vmax.f32 %v1400_v41, -100.0  ;;  %v1581_v19 = vmax.f32 %v1399_v51, -100.0  ;;  %v1402_v32 = vsub.f32 %v3626_v7, %v1338_v44  ;;  %v3632_v51 = vld [vmem:[#allocation31_spill] sm:$0xff] }
 0x4ea   :  { %1783 = vperm.xlu1 %2391, %v1576_v13   ;;  %1780 = vperm.xlu0 %2392, %v1575_v24   ;;  %v3627_v13 = vld [vmem:[#allocation24_spill] sm:$0xff]  ;;  %2481 = vlog2.f32 %v1626_v46  ;;  %v1628_v18 = vsub.f32 1.0, %v1562_v3  ;;  %v1564_v11 = vmin.f32 %v1532_v56, 1.0  ;;  %v1534_v35 = vmul.f32 %v3628_v33, %v1486_v30  ;;  %v3635_v33 = vld [vmem:[#allocation34_spill] sm:$0xff] }
 0x4eb   :  { %v1401_v24 = vsub.f32 %v3627_v13, %v1338_v44  ;;  %2483 = vlog2.f32 %v1625_v1  ;;  %v1627_v55 = vsub.f32 1.0, %v1561_v0  ;;  %v1563_v25 = vmin.f32 %v1531_v14, 1.0 }
 0x4ec   :  { %v2466_v15 = vpop.eup %2465  ;;  %v1533_v49 = vmul.f32 %v3629_v5, %v1486_v30  ;;  %v1584_v29 = vmax.f32 %v1402_v32, -100.0  ;;  %v1668_v42 = vmul.f32 0.6931472, %v2464_v23  ;;  %2485 = vlog2.f32 %v1628_v18  ;;  %v3633_v23 = vld [vmem:[#allocation28_spill] sm:$0xff]  ;;  %v3634_v32 = vld [vmem:[#allocation37_spill] sm:$0xff] }
 0x4ed   :  { %v3350_v9 = vpop.eup %2467  ;;  %v1583_v50 = vmax.f32 %v1401_v24, -100.0  ;;  %v1566_v4 = vmin.f32 %v1534_v35, 1.0  ;;  %2487 = vlog2.f32 %v1627_v55  ;;  %v1629_v58 = vsub.f32 1.0, %v1563_v25 }
 0x4ee   :  { %1789 = vperm.xlu1 %2391, %v1578_v36   ;;  %1786 = vperm.xlu0 %2392, %v1577_v8   ;;  %v2470_v2 = vpop.eup %2469  ;;  %v1426_v57 = vrot.slane %v3350_v9, %v2637_v12  ;;  %v1666_v36 = vmul.f32 0.6931472, %v2466_v15  ;;  %v1630_v8 = vsub.f32 1.0, %v1564_v11  ;;  %v1565_v39 = vmin.f32 %v1533_v49, 1.0 }
 0x4ef   :  { %v2472_v31 = vpop.eup %2471  ;;  %v1672_v6 = vmul.f32 0.6931472, %v2470_v2  ;;  %v1430_v12 = vrot.slane %v3350_v9, %v2926_v28  ;;  %v1714_v43 = vmax.f32 %v1668_v42, -100.0  ;;  %v1632_v44 = vsub.f32 1.0, %v1566_v4  ;;  %v3637_v4 = vld [vmem:[#allocation40_spill] sm:$0xff] }
 0x4f0   :  { %v1504_v63 = vmul.f32 %v3630_v26, %v1426_v57  ;;  %v1713_v47 = vmax.f32 %v1666_v36, -100.0  ;;  %v1670_v60 = vmul.f32 0.6931472, %v2472_v31  ;;  %v1503_v22 = vmul.f32 %v3631_v59, %v1426_v57 }
 0x4f1   :  { %v2474_v34 = vpop.eup %2473  ;;  %2489 = vlog2.f32 %v1630_v8  ;;  %v1716_v41 = vmax.f32 %v1672_v6, -100.0  ;;  %v1506_v46 = vmul.f32 %v3632_v51, %v1430_v12  ;;  %v1434_v28 = vrot.slane %v3350_v9, %v2929_v62 }
 0x4f2   :  { %1795 = vperm.xlu1 %2391, %v1580_v54   ;;  %1792 = vperm.xlu0 %2392, %v1579_v38   ;;  %v2476_v20 = vpop.eup %2475  ;;  %v1676_v54 = vmul.f32 0.6931472, %v2474_v34  ;;  %2491 = vlog2.f32 %v1629_v58  ;;  %v1631_v38 = vsub.f32 1.0, %v1565_v39  ;;  %v1536_v10 = vmin.f32 %v1504_v63, 1.0 }
 0x4f3   :  { %v1715_v3 = vmax.f32 %v1670_v60, -100.0  ;;  %v1674_v48 = vmul.f32 0.6931472, %v2476_v20  ;;  %v1535_v56 = vmin.f32 %v1503_v22, 1.0  ;;  %v1505_v1 = vmul.f32 %v3633_v23, %v1430_v12 }
 0x4f4   :  { %v2478_v30 = vpop.eup %2477  ;;  %2493 = vlog2.f32 %v1632_v44  ;;  %v1718_v14 = vmax.f32 %v1676_v54, -100.0  ;;  %v1538_v7 = vmin.f32 %v1506_v46, 1.0  ;;  %v1508_v13 = vmul.f32 %v3634_v32, %v1434_v28  ;;  %v3639_v44 = vld [vmem:[#allocation29_spill] sm:$0xff] }
 0x4f5   :  { %v2480_v40 = vpop.eup %2479  ;;  %v1680_v0 = vmul.f32 0.6931472, %v2478_v30  ;;  %2495 = vlog2.f32 %v1631_v38  ;;  %v1438_v62 = vrot.slane %v3350_v9, %v2940_v37  ;;  %v1717_v24 = vmax.f32 %v1674_v48, -100.0  ;;  %v3636_v37 = vld [vmem:[#allocation41_spill] sm:$0xff]  ;;  %v3641_v48 = vld [vmem:[#allocation32_spill] sm:$0xff] }
 0x4f6   :  { %1801 = vperm.xlu1 %2391, %v1582_v27   ;;  %1798 = vperm.xlu0 %2392, %v1581_v19   ;;  %v1678_v15 = vmul.f32 0.6931472, %v2480_v40  ;;  %v1602_v19 = vsub.f32 1.0, %v1536_v10  ;;  %v1601_v18 = vsub.f32 1.0, %v1535_v56  ;;  %v1537_v11 = vmin.f32 %v1505_v1, 1.0  ;;  %v3640_v10 = vld [vmem:[#allocation43_spill] sm:$0xff] }
 0x4f7   :  { %v2482_v61 = vpop.eup %2481  ;;  %v1507_v35 = vmul.f32 %v3635_v33, %v1434_v28  ;;  %v1720_v55 = vmax.f32 %v1680_v0, -100.0  ;;  %v1442_v57 = vrot.slane %v3350_v9, %v2952_v53  ;;  %v1510_v42 = vmul.f32 %v3636_v37, %v1438_v62 }
 0x4f8   :  { %v2484_v27 = vpop.eup %2483  ;;  %v1719_v5 = vmax.f32 %v1678_v15, -100.0  ;;  %v1684_v49 = vmul.f32 0.6931472, %v2482_v61  ;;  %2497 = vlog2.f32 %v1602_v19  ;;  %v1603_v36 = vsub.f32 1.0, %v1537_v11 }
 0x4f9   :  { %v2486_v25 = vpop.eup %2485  ;;  %v1682_v2 = vmul.f32 0.6931472, %v2484_v27  ;;  %2499 = vlog2.f32 %v1601_v18  ;;  %v1539_v8 = vmin.f32 %v1507_v35, 1.0  ;;  %v1509_v58 = vmul.f32 %v3637_v4, %v1438_v62  ;;  %v3642_v27 = vld [vmem:[#allocation44_spill] sm:$0xff] }
 0x4fa   :  { %1807 = vperm.xlu1 %2391, %v1584_v29   ;;  %1804 = vperm.xlu0 %2392, %v1583_v50   ;;  %v2488_v31 = vpop.eup %2487  ;;  %v1604_v29 = vsub.f32 1.0, %v1538_v7  ;;  %v1540_v50 = vmin.f32 %v1508_v13, 1.0  ;;  %v1688_v39 = vmul.f32 0.6931472, %v2486_v25  ;;  %v1722_v6 = vmax.f32 %v1684_v49, -100.0  ;;  %v3643_v13 = vld [vmem:[#allocation35_spill] sm:$0xff] }
 0x4fb   :  { %v1721_v26 = vmax.f32 %v1682_v2, -100.0  ;;  %v1686_v63 = vmul.f32 0.6931472, %v2488_v31  ;;  %v1446_v53 = vrot.slane %v3350_v9, %v2964_v45  ;;  %v1605_v59 = vsub.f32 1.0, %v1539_v8  ;;  %v3644_v49 = vld [vmem:[#allocation45_spill] sm:$0xff] }
 0x4fc   :  { %2501 = vlog2.f32 %v1604_v29  ;;  %v1606_v20 = vsub.f32 1.0, %v1540_v50  ;;  %v1541_v22 = vmin.f32 %v1509_v58, 1.0  ;;  %v1511_v30 = vmul.f32 %v3639_v44, %v1442_v57 }
 0x4fd   :  { %2503 = vlog2.f32 %v1603_v36  ;;  %v1724_v54 = vmax.f32 %v1688_v39, -100.0  ;;  %v1723_v40 = vmax.f32 %v1686_v63, -100.0  ;;  %v1514_v51 = vmul.f32 %v3640_v10, %v1446_v53 }
 0x4fe   :  { %2105 = vperm.xlu1 %2391, %v1714_v43   ;;  %2102 = vperm.xlu0 %2392, %v1713_v47   ;;  %v2490_v34 = vpop.eup %2489  ;;  %v1542_v43 = vmin.f32 %v1510_v42, 1.0  ;;  %v3638_v47 = vld [vmem:[#allocation42_spill] sm:$0xff]  ;;  %v1450_v45 = vrot.slane %v3350_v9, %v2976_v52  ;;  %2505 = vlog2.f32 %v1606_v20  ;;  %v1513_v56 = vmul.f32 %v3641_v48, %v1446_v53 }
 0x4ff   :  { %v2492_v12 = vpop.eup %2491  ;;  %v1512_v60 = vmul.f32 %v3638_v47, %v1442_v57  ;;  %2507 = vlog2.f32 %v1605_v59  ;;  %v1607_v1 = vsub.f32 1.0, %v1541_v22  ;;  %v1543_v0 = vmin.f32 %v1511_v30, 1.0  ;;  %v3645_v57 = vld [vmem:[#allocation38_spill] sm:$0xff] }
 0x500   :  { %v1608_v28 = vsub.f32 1.0, %v1542_v43  ;;  %v1690_v23 = vmul.f32 0.6931472, %v2492_v12  ;;  %v1546_v15 = vmin.f32 %v1514_v51, 1.0  ;;  %v1516_v19 = vmul.f32 %v3642_v27, %v1450_v45 }
 0x501   :  { %v2494_v38 = vpop.eup %2493  ;;  %v1454_v52 = vrot.slane %v3350_v9, %v2988_v21  ;;  %v1545_v32 = vmin.f32 %v1513_v56, 1.0  ;;  %v1515_v62 = vmul.f32 %v3643_v13, %v1450_v45  ;;  %v1609_v33 = vsub.f32 1.0, %v1543_v0 }
 0x502   :  { %2111 = vperm.xlu1 %2391, %v1716_v41   ;;  %2108 = vperm.xlu0 %2392, %v1715_v3   ;;  %v1692_v41 = vmul.f32 0.6931472, %v2490_v34  ;;  %v2496_v46 = vpop.eup %2495  ;;  %v1544_v3 = vmin.f32 %v1512_v60, 1.0  ;;  %v1696_v61 = vmul.f32 0.6931472, %v2494_v38  ;;  %2509 = vlog2.f32 %v1608_v28 }
 0x503   :  { %v1725_v11 = vmax.f32 %v1690_v23, -100.0  ;;  %2511 = vlog2.f32 %v1607_v1  ;;  %v1612_v25 = vsub.f32 1.0, %v1546_v15  ;;  %v1518_v2 = vmul.f32 %v3644_v49, %v1454_v52 }
 0x504   :  { %v1610_v7 = vsub.f32 1.0, %v1544_v3  ;;  %v1726_v18 = vmax.f32 %v1692_v41, -100.0  ;;  %v1611_v21 = vsub.f32 1.0, %v1545_v32  ;;  %v1547_v9 = vmin.f32 %v1515_v62, 1.0 }
 0x505   :  { %v1517_v31 = vmul.f32 %v3645_v57, %v1454_v52  ;;  %v1550_v4 = vmin.f32 %v1518_v2, 1.0 }
 0x506   :  { %2117 = vperm.xlu1 %2391, %v1718_v14   ;;  %2114 = vperm.xlu0 %2392, %v1717_v24   ;;  %v1694_v14 = vmul.f32 0.6931472, %v2496_v46  ;;  %v2498_v24 = vpop.eup %2497  ;;  %2513 = vlog2.f32 %v1610_v7  ;;  %v1613_v58 = vsub.f32 1.0, %v1547_v9 }
 0x507   :  { %v2500_v35 = vpop.eup %2499  ;;  %v1636_v37 = vmul.f32 0.6931472, %v2498_v24  ;;  %2515 = vlog2.f32 %v1609_v33  ;;  %v1549_v39 = vmin.f32 %v1517_v31, 1.0  ;;  %v1616_v20 = vsub.f32 1.0, %v1550_v4 }
 0x508   :  { %v1727_v50 = vmax.f32 %v1694_v14, -100.0  ;;  %v1634_v42 = vmul.f32 0.6931472, %v2500_v35  ;;  %2517 = vlog2.f32 %v1612_v25 }
 0x509   :  { %v2502_v29 = vpop.eup %2501  ;;  %2519 = vlog2.f32 %v1611_v21  ;;  %v1615_v43 = vsub.f32 1.0, %v1549_v39 }
 0x50a   :  { %2123 = vperm.xlu1 %2391, %v1720_v55   ;;  %2120 = vperm.xlu0 %2392, %v1719_v5   ;;  %v1728_v55 = vmax.f32 %v1696_v61, -100.0  ;;  %v1548_v5 = vmin.f32 %v1516_v19, 1.0  ;;  %v2504_v36 = vpop.eup %2503  ;;  %v1640_v63 = vmul.f32 0.6931472, %v2502_v29 }
 0x50b   :  { %v2506_v34 = vpop.eup %2505  ;;  %v1638_v53 = vmul.f32 0.6931472, %v2504_v36 }
 0x50c   :  { %v1614_v8 = vsub.f32 1.0, %v1548_v5  ;;  %v2508_v12 = vpop.eup %2507  ;;  %v1700_v60 = vmax.f32 %v1640_v63, -100.0  ;;  %v1644_v22 = vmul.f32 0.6931472, %v2506_v34 }
 0x50d   :  { %v1699_v59 = vmax.f32 %v1638_v53, -100.0  ;;  %v1642_v44 = vmul.f32 0.6931472, %v2508_v12 }
 0x50e   :  { %2129 = vperm.xlu1 %2391, %v1722_v6   ;;  %2126 = vperm.xlu0 %2392, %v1721_v26   ;;  %v1698_v6 = vmax.f32 %v1636_v37, -100.0  ;;  %v1697_v26 = vmax.f32 %v1634_v42, -100.0  ;;  %2521 = vlog2.f32 %v1614_v8  ;;  %v1702_v38 = vmax.f32 %v1644_v22, -100.0 }
 0x50f   :  { %2523 = vlog2.f32 %v1613_v58  ;;  %v2510_v47 = vpop.eup %2509 }
 0x510   :  { %v2512_v30 = vpop.eup %2511  ;;  %2525 = vlog2.f32 %v1616_v20  ;;  %v1648_v41 = vmul.f32 0.6931472, %v2510_v47 }
 0x511   :  { %2527 = vlog2.f32 %v1615_v43  ;;  %v1646_v10 = vmul.f32 0.6931472, %v2512_v30 }
 0x512   :  { %2135 = vperm.xlu1 %2391, %v1724_v54   ;;  %2132 = vperm.xlu0 %2392, %v1723_v40   ;;  %v1701_v40 = vmax.f32 %v1642_v44, -100.0  ;;  %v1704_v28 = vmax.f32 %v1648_v41, -100.0 }
 0x513   :  { %v2514_v54 = vpop.eup %2513  ;;  %v1703_v3 = vmax.f32 %v1646_v10, -100.0 }
 0x514   :  { %v2516_v51 = vpop.eup %2515  ;;  %v1652_v48 = vmul.f32 0.6931472, %v2514_v54 }
 0x515   :  { %v2518_v45 = vpop.eup %2517  ;;  %v1650_v56 = vmul.f32 0.6931472, %v2516_v51 }
 0x516   :  { %2141 = vperm.xlu1 %2391, %v1726_v18   ;;  %2138 = vperm.xlu0 %2392, %v1725_v11   ;;  %v2520_v46 = vpop.eup %2519  ;;  %v1706_v0 = vmax.f32 %v1652_v48, -100.0  ;;  %v1656_v14 = vmul.f32 0.6931472, %v2518_v45 }
 0x517   :  { %v1705_v61 = vmax.f32 %v1650_v56, -100.0  ;;  %v1654_v15 = vmul.f32 0.6931472, %v2520_v46 }
 0x518   :  { %v1708_v62 = vmax.f32 %v1656_v14, -100.0 }
 0x519   :  { %v1707_v24 = vmax.f32 %v1654_v15, -100.0 }
 0x51a   :  { %2147 = vperm.xlu1 %2391, %v1728_v55   ;;  %2144 = vperm.xlu0 %2392, %v1727_v50  }
 0x51b   :  { %v2522_v23 = vpop.eup %2521 }
 0x51c   :  { %v2524_v1 = vpop.eup %2523  ;;  %v1660_v18 = vmul.f32 0.6931472, %v2522_v23 }
 0x51d   :  { %v2526_v52 = vpop.eup %2525  ;;  %v1658_v11 = vmul.f32 0.6931472, %v2524_v1 }
 0x51e   :  { %2057 = vperm.xlu1 %2391, %v1698_v6   ;;  %2054 = vperm.xlu0 %2392, %v1697_v26   ;;  %v2528_v13 = vpop.eup %2527  ;;  %v1710_v49 = vmax.f32 %v1660_v18, -100.0  ;;  %v1664_v21 = vmul.f32 0.6931472, %v2526_v52 }
 0x51f   :  { %v1709_v2 = vmax.f32 %v1658_v11, -100.0  ;;  %v1662_v9 = vmul.f32 0.6931472, %v2528_v13 }
 0x520   :  { %v1712_v36 = vmax.f32 %v1664_v21, -100.0 }
 0x521   :  { %v1711_v8 = vmax.f32 %v1662_v9, -100.0 }
 0x522   :  { %2063 = vperm.xlu1 %2391, %v1700_v60   ;;  %2060 = vperm.xlu0 %2392, %v1699_v59  }
 0x526   :  { %2069 = vperm.xlu1 %2391, %v1702_v38   ;;  %2066 = vperm.xlu0 %2392, %v1701_v40  }
 0x52a   :  { %2075 = vperm.xlu1 %2391, %v1704_v28   ;;  %2072 = vperm.xlu0 %2392, %v1703_v3  }
 0x52e   :  { %v1811_v27 = vpop.permute.xlu0 %1810  ;;  %v1814_v19 = vpop.permute.xlu1 %1813  ;;  %2081 = vperm.xlu1 %2391, %v1706_v0   ;;  %2078 = vperm.xlu0 %2392, %v1705_v61  }
 0x52f   :  { %v1932_v7 = vrot.slane %v1811_v27, %v2804_v16  ;;  %v1936_v32 = vrot.slane %v1814_v19, %v2807_v17 }
 0x531   :  { %v1937_v33 = vsel %vm662_vm5, %v1936_v32, %v1932_v7 }
 0x532   :  { %v1817_v35 = vpop.permute.xlu0 %1816  ;;  %v1820_v55 = vpop.permute.xlu1 %1819  ;;  %2087 = vperm.xlu1 %2391, %v1708_v62   ;;  %2084 = vperm.xlu0 %2392, %v1707_v24  }
 0x533   :  { %v1941_v25 = vrot.slane %v1817_v35, %v2804_v16  ;;  %v1945_v5 = vrot.slane %v1820_v55, %v2807_v17 }
 0x535   :  { %v1946_v57 = vsel %vm662_vm5, %v1945_v5, %v1941_v25 }
 0x536   :  { %v2008_v31 = vsel %vm799_vm6, %v1946_v57, %v1937_v33  ;;  %v1823_v29 = vpop.permute.xlu0 %1822  ;;  %v1826_v50 = vpop.permute.xlu1 %1825  ;;  %2093 = vperm.xlu1 %2391, %v1710_v49   ;;  %2090 = vperm.xlu0 %2392, %v1709_v2  }
 0x537   :  { %v1950_v37 = vrot.slane %v1823_v29, %v2804_v16  ;;  %v1954_v42 = vrot.slane %v1826_v50, %v2807_v17 }
 0x539   :  { %v1955_v4 = vsel %vm662_vm5, %v1954_v42, %v1950_v37 }
 0x53a   :  { %v2009_v58 = vsel %vm801_vm7, %v1955_v4, %v2008_v31  ;;  %v1829_v39 = vpop.permute.xlu0 %1828  ;;  %v1832_v34 = vpop.permute.xlu1 %1831  ;;  %2099 = vperm.xlu1 %2391, %v1712_v36   ;;  %2096 = vperm.xlu0 %2392, %v1711_v8  }
 0x53b   :  { %v1959_v6 = vrot.slane %v1829_v39, %v2804_v16  ;;  %v1963_v26 = vrot.slane %v1832_v34, %v2807_v17 }
 0x53d   :  { %v1964_v63 = vsel %vm662_vm5, %v1963_v26, %v1959_v6 }
 0x53e   :  { %v2010_v53 = vsel %vm803_vm8, %v1964_v63, %v2009_v58  ;;  %v1835_v12 = vpop.permute.xlu0 %1834  ;;  %v1838_v20 = vpop.permute.xlu1 %1837 }
 0x53f   :  { %v1968_v43 = vrot.slane %v1835_v12, %v2804_v16  ;;  %v1972_v47 = vrot.slane %v1838_v20, %v2807_v17 }
 0x541   :  { %v1973_v60 = vsel %vm662_vm5, %v1972_v47, %v1968_v43 }
 0x542   :  { %v2011_v59 = vsel %vm805_vm9, %v1973_v60, %v2010_v53  ;;  %v1841_v22 = vpop.permute.xlu0 %1840  ;;  %v1844_v44 = vpop.permute.xlu1 %1843 }
 0x543   :  { %v1977_v30 = vrot.slane %v1841_v22, %v2804_v16  ;;  %v1981_v54 = vrot.slane %v1844_v44, %v2807_v17 }
 0x545   :  { %v1982_v38 = vsel %vm662_vm5, %v1981_v54, %v1977_v30 }
 0x546   :  { %v2012_v40 = vsel %vm807_vm10, %v1982_v38, %v2011_v59  ;;  %v1847_v41 = vpop.permute.xlu0 %1846  ;;  %v1850_v10 = vpop.permute.xlu1 %1849 }
 0x547   :  { %v1986_v51 = vrot.slane %v1847_v41, %v2804_v16  ;;  %v1990_v45 = vrot.slane %v1850_v10, %v2807_v17 }
 0x549   :  { %v1991_v46 = vsel %vm662_vm5, %v1990_v45, %v1986_v51 }
 0x54a   :  { %v2013_v28 = vsel %vm809_vm11, %v1991_v46, %v2012_v40  ;;  %v1853_v3 = vpop.permute.xlu0 %1852  ;;  %v1856_v48 = vpop.permute.xlu1 %1855 }
 0x54b   :  { %v1995_v56 = vrot.slane %v1853_v3, %v2804_v16  ;;  %v1999_v23 = vrot.slane %v1856_v48, %v2807_v17 }
 0x54d   :  { %v2000_v1 = vsel %vm662_vm5, %v1999_v23, %v1995_v56 }
 0x54e   :  { %v3419_v0 = vsel %vm811_vm12, %v2000_v1, %v2013_v28 }
 0x559   :  { %v1763_v61 = vpop.permute.xlu0 %1762  ;;  %v1766_v14 = vpop.permute.xlu1 %1765 }
 0x55a   :  { %v1860_v15 = vrot.slane %v1763_v61, %v2804_v16  ;;  %v1864_v27 = vrot.slane %v1766_v14, %v2807_v17 }
 0x55c   :  { %v1865_v19 = vsel %vm662_vm5, %v1864_v27, %v1860_v15 }
 0x55d   :  { %v1769_v52 = vpop.permute.xlu0 %1768  ;;  %v1772_v7 = vpop.permute.xlu1 %1771 }
 0x55e   :  { %v1869_v32 = vrot.slane %v1769_v52, %v2804_v16  ;;  %v1873_v13 = vrot.slane %v1772_v7, %v2807_v17 }
 0x560   :  { %v1874_v62 = vsel %vm662_vm5, %v1873_v13, %v1869_v32 }
 0x561   :  { %v2001_v24 = vsel %vm799_vm6, %v1874_v62, %v1865_v19  ;;  %v1775_v18 = vpop.permute.xlu0 %1774  ;;  %v1778_v11 = vpop.permute.xlu1 %1777 }
 0x562   :  { %v1878_v33 = vrot.slane %v1775_v18, %v2804_v16  ;;  %v1882_v35 = vrot.slane %v1778_v11, %v2807_v17 }
 0x564   :  { %v1883_v55 = vsel %vm662_vm5, %v1882_v35, %v1878_v33 }
 0x565   :  { %v2002_v25 = vsel %vm801_vm7, %v1883_v55, %v2001_v24  ;;  %v1781_v5 = vpop.permute.xlu0 %1780  ;;  %v1784_v49 = vpop.permute.xlu1 %1783 }
 0x566   :  { %v1887_v2 = vrot.slane %v1781_v5, %v2804_v16  ;;  %v1891_v21 = vrot.slane %v1784_v49, %v2807_v17 }
 0x568   :  { %v1892_v9 = vsel %vm662_vm5, %v1891_v21, %v1887_v2 }
 0x569   :  { %v2003_v57 = vsel %vm803_vm8, %v1892_v9, %v2002_v25  ;;  %v1787_v31 = vpop.permute.xlu0 %1786  ;;  %v1790_v29 = vpop.permute.xlu1 %1789 }
 0x56a   :  { %v1896_v50 = vrot.slane %v1787_v31, %v2804_v16  ;;  %v1900_v37 = vrot.slane %v1790_v29, %v2807_v17 }
 0x56c   :  { %v1901_v42 = vsel %vm662_vm5, %v1900_v37, %v1896_v50 }
 0x56d   :  { %v2004_v36 = vsel %vm805_vm9, %v1901_v42, %v2003_v57  ;;  %v1793_v8 = vpop.permute.xlu0 %1792  ;;  %v1796_v4 = vpop.permute.xlu1 %1795 }
 0x56e   :  { %v1905_v58 = vrot.slane %v1793_v8, %v2804_v16  ;;  %v1909_v39 = vrot.slane %v1796_v4, %v2807_v17 }
 0x570   :  { %v1910_v34 = vsel %vm662_vm5, %v1909_v39, %v1905_v58 }
 0x571   :  { %v2005_v6 = vsel %vm807_vm10, %v1910_v34, %v2004_v36  ;;  %v1799_v26 = vpop.permute.xlu0 %1798  ;;  %v1802_v63 = vpop.permute.xlu1 %1801 }
 0x572   :  { %v1914_v53 = vrot.slane %v1799_v26, %v2804_v16  ;;  %v1918_v12 = vrot.slane %v1802_v63, %v2807_v17 }
 0x574   :  { %v1919_v20 = vsel %vm662_vm5, %v1918_v12, %v1914_v53 }
 0x575   :  { %v2006_v43 = vsel %vm809_vm11, %v1919_v20, %v2005_v6  ;;  %v1805_v47 = vpop.permute.xlu0 %1804  ;;  %v1808_v60 = vpop.permute.xlu1 %1807 }
 0x576   :  { %v1923_v59 = vrot.slane %v1805_v47, %v2804_v16  ;;  %v1927_v22 = vrot.slane %v1808_v60, %v2807_v17  ;;  %v1568_v47 = vld [vmem:[%s3540_s4 + $0x8] sm:$0xff] }
 0x578   :  { %v1928_v44 = vsel %vm662_vm5, %v1927_v22, %v1923_v59 }
 0x579   :  { %v3452_v30 = vsel %vm811_vm12, %v1928_v44, %v2006_v43  ;;  %v2103_v54 = vpop.permute.xlu0 %2102  ;;  %v2106_v38 = vpop.permute.xlu1 %2105  ;;  %v2020_v44 = vsub.f32 1.0, %v1568_v47 }
 0x57a   :  { %v2224_v11 = vrot.slane %v2103_v54, %v2804_v16  ;;  %v2228_v33 = vrot.slane %v2106_v38, %v2807_v17 }
 0x57c   :  { %v2229_v37 = vsel %vm662_vm5, %v2228_v33, %v2224_v11 }
 0x57d   :  { %v2109_v40 = vpop.permute.xlu0 %2108  ;;  %v2112_v41 = vpop.permute.xlu1 %2111 }
 0x57e   :  { %v2233_v7 = vrot.slane %v2109_v40, %v2804_v16  ;;  %v2237_v32 = vrot.slane %v2112_v41, %v2807_v17 }
 0x580   :  { %v2238_v49 = vsel %vm662_vm5, %v2237_v32, %v2233_v7 }
 0x581   :  { %v2115_v10 = vpop.permute.xlu0 %2114  ;;  %v2118_v51 = vpop.permute.xlu1 %2117  ;;  %v2300_v4 = vsel %vm799_vm6, %v2238_v49, %v2229_v37 }
 0x582   :  { %v2242_v13 = vrot.slane %v2115_v10, %v2804_v16  ;;  %v2246_v62 = vrot.slane %v2118_v51, %v2807_v17 }
 0x584   :  { %v2247_v9 = vsel %vm662_vm5, %v2246_v62, %v2242_v13  ;;  %v2018_v13 = vmul.f32 %v3419_v0, %v1568_v47 }
 0x585   :  { %v2121_v45 = vpop.permute.xlu0 %2120  ;;  %v2124_v46 = vpop.permute.xlu1 %2123  ;;  %v2301_v39 = vsel %vm801_vm7, %v2247_v9, %v2300_v4 }
 0x586   :  { %v2251_v35 = vrot.slane %v2121_v45, %v2804_v16  ;;  %v2255_v55 = vrot.slane %v2124_v46, %v2807_v17 }
 0x588   :  { %v2256_v42 = vsel %vm662_vm5, %v2255_v55, %v2251_v35 }
 0x589   :  { %v2127_v28 = vpop.permute.xlu0 %2126  ;;  %v2130_v3 = vpop.permute.xlu1 %2129  ;;  %v2302_v6 = vsel %vm803_vm8, %v2256_v42, %v2301_v39 }
 0x58a   :  { %v2260_v25 = vrot.slane %v2127_v28, %v2804_v16  ;;  %v2264_v5 = vrot.slane %v2130_v3, %v2807_v17 }
 0x58c   :  { %v2265_v58 = vsel %vm662_vm5, %v2264_v5, %v2260_v25 }
 0x58d   :  { %v2133_v48 = vpop.permute.xlu0 %2132  ;;  %v2136_v56 = vpop.permute.xlu1 %2135  ;;  %v2303_v12 = vsel %vm805_vm9, %v2265_v58, %v2302_v6 }
 0x58e   :  { %v2269_v2 = vrot.slane %v2133_v48, %v2804_v16  ;;  %v2273_v21 = vrot.slane %v2136_v56, %v2807_v17 }
 0x590   :  { %v2274_v34 = vsel %vm662_vm5, %v2273_v21, %v2269_v2 }
 0x591   :  { %v2139_v23 = vpop.permute.xlu0 %2138  ;;  %v2142_v1 = vpop.permute.xlu1 %2141  ;;  %v2304_v43 = vsel %vm807_vm10, %v2274_v34, %v2303_v12 }
 0x592   :  { %v2278_v57 = vrot.slane %v2139_v23, %v2804_v16  ;;  %v2282_v31 = vrot.slane %v2142_v1, %v2807_v17 }
 0x594   :  { %v2283_v26 = vsel %vm662_vm5, %v2282_v31, %v2278_v57  ;;  %v3646_v57 = vld [vmem:[#allocation11_spill] sm:$0xff] }
 0x595   :  { %v2145_v61 = vpop.permute.xlu0 %2144  ;;  %v2148_v14 = vpop.permute.xlu1 %2147  ;;  %v2305_v60 = vsel %vm809_vm11, %v2283_v26, %v2304_v43  ;;  %v2317_v31 = vadd.s32 8, %v3646_v57 }
 0x596   :  { %v2287_v36 = vrot.slane %v2145_v61, %v2804_v16  ;;  %v2291_v8 = vrot.slane %v2148_v14, %v2807_v17 }
 0x597   :  { %vm2319_vm14 = vcmp.lt.s32.totalorder %v2317_v31, 12 }
 0x598   :  { %v2292_v20 = vsel %vm662_vm5, %v2291_v8, %v2287_v36 }
 0x599   :  { %v3454_v15 = vpop.permute.xlu0 %2054  ;;  %v3456_v27 = vpop.permute.xlu1 %2057  ;;  %v2306_v54 = vsel %vm811_vm12, %v2292_v20, %v2305_v60 }
 0x59a   :  { %v2152_v51 = vrot.slane %v3454_v15, %v2804_v16  ;;  %v2156_v45 = vrot.slane %v3456_v27, %v2807_v17  ;;  %v2310_v61 = vmul.f32 %v2306_v54, %v2020_v44 }
 0x59c   :  { %v2157_v27 = vsel %vm662_vm5, %v2156_v45, %v2152_v51  ;;  %v2312_v0 = vadd.f32 %v2310_v61, %v2018_v13 }
 0x59d   :  { %v2061_v19 = vpop.permute.xlu0 %2060  ;;  %v2064_v52 = vpop.permute.xlu1 %2063 }
 0x59e   :  { %v2161_v59 = vrot.slane %v2061_v19, %v2804_v16  ;;  %v2165_v22 = vrot.slane %v2064_v52, %v2807_v17  ;;  %v2314_v36 = vsub.f32 0.0, %v2312_v0 }
 0x5a0   :  { %v2166_v56 = vsel %vm662_vm5, %v2165_v22, %v2161_v59  ;;  %v2321_v39 = vsel %vm2319_vm14, %v2314_v36, 0.0 }
 0x5a1   :  { %v2067_v24 = vpop.permute.xlu0 %2066  ;;  %v2070_v18 = vpop.permute.xlu1 %2069  ;;  %v2293_v62 = vsel %vm799_vm6, %v2166_v56, %v2157_v27  ;;  %v2323_v34 = vsel %vm822_vm13, %v2321_v39, 0.0 }
 0x5a2   :  { %v2170_v38 = vrot.slane %v2067_v24, %v2804_v16  ;;  %v2174_v40 = vrot.slane %v2070_v18, %v2807_v17  ;;  %v1567_v18 = vld [vmem:[%s3540_s4] sm:$0xff] }
 0x5a3   :  { %v2019_v5 = vsub.f32 1.0, %v1567_v18  ;;  %v2017_v8 = vmul.f32 %v3452_v30, %v1567_v18 }
 0x5a4   :  { %v2175_v14 = vsel %vm662_vm5, %v2174_v40, %v2170_v38 }
 0x5a5   :  { %v2073_v29 = vpop.permute.xlu0 %2072  ;;  %v2076_v50 = vpop.permute.xlu1 %2075  ;;  %v2294_v11 = vsel %vm801_vm7, %v2175_v14, %v2293_v62 }
 0x5a6   :  { %v2179_v46 = vrot.slane %v2073_v29, %v2804_v16  ;;  %v2183_v28 = vrot.slane %v2076_v50, %v2807_v17 }
 0x5a8   :  { %v2184_v52 = vsel %vm662_vm5, %v2183_v28, %v2179_v46 }
 0x5a9   :  { %v2079_v63 = vpop.permute.xlu0 %2078  ;;  %v2082_v53 = vpop.permute.xlu1 %2081  ;;  %v2295_v35 = vsel %vm803_vm8, %v2184_v52, %v2294_v11 }
 0x5aa   :  { %v2188_v3 = vrot.slane %v2079_v63, %v2804_v16  ;;  %v2192_v48 = vrot.slane %v2082_v53, %v2807_v17 }
 0x5ac   :  { %v2193_v24 = vsel %vm662_vm5, %v2192_v48, %v2188_v3 }
 0x5ad   :  { %v2085_v41 = vpop.permute.xlu0 %2084  ;;  %v2088_v10 = vpop.permute.xlu1 %2087  ;;  %v2296_v2 = vsel %vm805_vm9, %v2193_v24, %v2295_v35 }
 0x5ae   :  { %v2197_v23 = vrot.slane %v2085_v41, %v2804_v16  ;;  %v2201_v1 = vrot.slane %v2088_v10, %v2807_v17 }
 0x5b0   :  { %v2202_v33 = vsel %vm662_vm5, %v2201_v1, %v2197_v23 }
 0x5b1   :  { %v2091_v15 = vpop.permute.xlu0 %2090  ;;  %v2094_v19 = vpop.permute.xlu1 %2093  ;;  %v2297_v29 = vsel %vm807_vm10, %v2202_v33, %v2296_v2 }
 0x5b2   :  { %v2206_v7 = vrot.slane %v2091_v15, %v2804_v16  ;;  %v2210_v32 = vrot.slane %v2094_v19, %v2807_v17 }
 0x5b4   :  { %v2211_v55 = vsel %vm662_vm5, %v2210_v32, %v2206_v7 }
 0x5b5   :  { %v2097_v25 = vpop.permute.xlu0 %2096  ;;  %v2100_v49 = vpop.permute.xlu1 %2099  ;;  %v2298_v50 = vsel %vm809_vm11, %v2211_v55, %v2297_v29 }
 0x5b6   :  { %v2215_v21 = vrot.slane %v2097_v25, %v2804_v16  ;;  %v2219_v9 = vrot.slane %v2100_v49, %v2807_v17 }
 0x5b8   :  { %v2220_v37 = vsel %vm662_vm5, %v2219_v9, %v2215_v21 }
 0x5b9   :  { %v2299_v42 = vsel %vm811_vm12, %v2220_v37, %v2298_v50 }
 0x5ba   :  { %v2309_v4 = vmul.f32 %v2299_v42, %v2019_v5 }
 0x5bc   :  { %v2311_v58 = vadd.f32 %v2309_v4, %v2017_v8 }
 0x5be   :  { %v2313_v16 = vsub.f32 0.0, %v2311_v58 }
 0x5c0   :  { %v2322_v17 = vsel %vm822_vm13, %v2313_v16, 0.0 }
 0x5c1   :  { %v2324_v6 = vadd.f32 %v2323_v34, %v2322_v17 }
 0x5c3   :  { %2325 = vadd.xlane.f32.xlu0 %v2324_v6 }
 0x64c   :  { %v2326_v26 = vpop.xlane.xlu0 %2325 }
 0x64d   :  { %v2327_v63 = vrot.slane %v2326_v26, 4 }
 0x64f   :  { %v2328_v53 = vadd.f32 %v2327_v63, %v2326_v26 }
 0x651   :  { %v2329_v12 = vrot.slane %v2328_v53, 2 }
 0x653   :  { %v2330_v20 = vadd.f32 %v2329_v12, %v2328_v53 }
 0x655   :  { %v2331_v43 = vrot.slane %v2330_v20, 1 }
 0x657   :  { %v2332_v47 = vadd.f32 %v2331_v43, %v2330_v20 }
 0x659   :  { %2381 = vpush %v2332_v47 }
 0x68a   :  { %s2382_s4 = spop %2381 }
 0x68b   :  { %s2334_s13 = smul.f32 0.008333334, %s2382_s4 }
 0x68d   :  { %2336 = sst [smem:[#allocation7]] %s2334_s13 }
 0x68e   :  { %2344 = dma.smem_to_hbm %s2589_s14, 16, %s3541_s5, [#allocation4]  }
 0x68f   :  { %2581 = dma.done.wait [#allocation4], 16  }
 0x690   :  { %2582 = vsyncadd [#allocation4], 4294967280 }
 0x691   :  { %2348 = sfence }
 0x692   :  { %2349 = vsyncpa [#allocation3], 1 }
 0x693   :  { %2350 = vsyncpa [#allocation6], 1 }
 0x694   :  { %2351 = vsyncpa [#allocation4], 1 }

</bundles_post_ra>
